<compile_context>
chip_gen: v7x
topology: tpu7x:2x2x1
jax: 0.10.0
libtpu: 0.0.40
codegen_flags: <defaults>
</compile_context>

<pallas_src>
import math
from functools import partial

import jax
import jax.numpy as jnp
from jax import lax
from jax.experimental import pallas as pl
from jax.experimental.pallas import tpu as pltpu


def _round_up(n, m):
    return ((n + m - 1) // m) * m


def _cbam_kernel(x_ref, w1t_ref, w2_ref, cw_ref, cb_ref, o_ref, fpad_ref,
                 *, C, H, W, K, OFF):
    HW = H * W
    p = K // 2

    # (C, HW) lane-dense block for the current batch element.
    x = x_ref[0].astype(jnp.float32)

    # ---------------- Channel attention (VPU only, no MXU) ----------------
    mx = jnp.max(x, axis=1, keepdims=True)                       # (C, 1)
    av = jnp.sum(x, axis=1, keepdims=True) * (1.0 / float(HW))   # (C, 1)

    w1t = w1t_ref[...]                                           # (C, Cr) == w1.T
    w2 = w2_ref[...]                                             # (C, Cr)

    def se(p_col):                                               # p_col: (C, 1)
        # h = relu(w1 @ p):   sum over C (sublane axis)          -> (1, Cr)
        h = jnp.maximum(jnp.sum(w1t * p_col, axis=0, keepdims=True), 0.0)
        # se = w2 @ h:        sum over Cr (lane axis)            -> (C, 1)
        return jnp.sum(w2 * h, axis=1, keepdims=True)

    ca = jax.nn.sigmoid(se(mx) + se(av))                         # (C, 1)
    out = x * ca                                                 # (C, HW)

    # ---------------- Spatial attention ----------------
    smax = jnp.max(out, axis=0, keepdims=True)                   # (1, HW)
    smean = jnp.sum(out, axis=0, keepdims=True) * (1.0 / float(C))

    # Flat zero-padded maps in VMEM scratch. Center starts at lane-aligned OFF, so the
    # two center stores are unmasked; the tap loads below use static (shifted) offsets.
    fpad_ref[...] = jnp.zeros_like(fpad_ref)
    fpad_ref[0:1, OFF:OFF + HW] = smax
    fpad_ref[1:2, OFF:OFF + HW] = smean

    # Hoist all scalar SMEM reads ahead of the vector FMA loop.
    wts = [cw_ref[i] for i in range(2 * K * K)]
    bias = cb_ref[0]

    # Output column index per lane (for masking row-boundary wrap in the flat layout).
    col = lax.broadcasted_iota(jnp.int32, (1, HW), 1) % W

    acc = jnp.zeros((1, HW), jnp.float32)
    for dx in range(K):
        ox = dx - p
        inner = jnp.zeros((1, HW), jnp.float32)
        for ch in range(2):
            for dy in range(K):
                oy = dy - p
                s = OFF + oy * W + ox                            # static offset
                inner = inner + wts[ch * K * K + dy * K + dx] * fpad_ref[ch:ch + 1, s:s + HW]
        jcol = col + ox
        mask = jnp.logical_and(jcol >= 0, jcol < W)
        acc = acc + jnp.where(mask, inner, 0.0)

    sa = jax.nn.sigmoid(acc + bias)                              # (1, HW)

    # Residual (CBAMBlock: out*sa + x), single fused lane-dense store.
    o_ref[0] = (out * sa + x).astype(o_ref.dtype)


def cbam_block(x, w1, w2, conv_w, conv_b):
    """x: (B, C, H, W); w1: (Cr, C); w2: (C, Cr); conv_w: (2, K, K); conv_b: (1,)."""
    B, C, H, W = x.shape
    Cr = w1.shape[0]
    K = conv_w.shape[-1]
    HW = H * W
    p = K // 2

    # Lane-aligned start of the "center" region in the flat padded scratch, with at
    # least p*W + p zeros of prefix; suffix sized so every tap load stays in bounds.
    off = _round_up(p * W + p, 128)
    padl = _round_up(off + HW + p * W + p, 128)

    x_flat = x.reshape(B, C, HW)                                 # free layout merge
    w1t = jnp.transpose(w1).astype(jnp.float32)                  # (C, Cr)
    w2f = w2.astype(jnp.float32)                                 # (C, Cr)
    cw_flat = conv_w.reshape(-1).astype(jnp.float32)             # (2*K*K,) scalars
    cb = conv_b.reshape(-1).astype(jnp.float32)                  # (1,)

    kernel = partial(_cbam_kernel, C=C, H=H, W=W, K=K, OFF=off)

    out_flat = pl.pallas_call(
        kernel,
        out_shape=jax.ShapeDtypeStruct((B, C, HW), x.dtype),
        grid=(B,),
        in_specs=[
            pl.BlockSpec((1, C, HW), lambda b: (b, 0, 0)),       # lane-dense activations
            pl.BlockSpec((C, Cr), lambda b: (0, 0)),             # w1.T (tiny, VMEM)
            pl.BlockSpec((C, Cr), lambda b: (0, 0)),             # w2   (tiny, VMEM)
            pl.BlockSpec(memory_space=pltpu.MemorySpace.SMEM),   # conv weights (scalars)
            pl.BlockSpec(memory_space=pltpu.MemorySpace.SMEM),   # conv bias
        ],
        out_specs=pl.BlockSpec((1, C, HW), lambda b: (b, 0, 0)),
        scratch_shapes=[pltpu.VMEM((2, padl), jnp.float32)],     # flat padded maps
        compiler_params=pltpu.CompilerParams(
            dimension_semantics=("parallel",),                   # batch is independent
        ),
    )(x_flat, w1t, w2f, cw_flat, cb)

    return out_flat.reshape(B, C, H, W)


def cbam_reference(x, w1, w2, conv_w, conv_b):
    """Pure-JAX reference mirroring the PyTorch forward."""
    K = conv_w.shape[-1]

    mx = jnp.max(x, axis=(2, 3))                                 # (B, C)
    av = jnp.mean(x, axis=(2, 3))                                # (B, C)

    def se(v):
        h = jnp.maximum(v @ w1.T, 0.0)                           # (B, Cr)
        return h @ w2.T                                          # (B, C)

    ca = jax.nn.sigmoid(se(mx) + se(av))[:, :, None, None]
    out = x * ca

    smax = jnp.max(out, axis=1, keepdims=True)
    smean = jnp.mean(out, axis=1, keepdims=True)
    s = jnp.concatenate([smax, smean], axis=1)                   # (B, 2, H, W)
    w = conv_w[None]                                             # (1, 2, K, K) OIHW
    conv = jax.lax.conv_general_dilated(
        s, w, window_strides=(1, 1), padding=[(K // 2, K // 2)] * 2,
        dimension_numbers=("NCHW", "OIHW", "NCHW"))
    sa = jax.nn.sigmoid(conv + conv_b.reshape(1, 1, 1, 1))
    return out * sa + x


if __name__ == "__main__":
    B, C, H, W = 2, 32, 16, 16
    reduction = 16
    Cr = C // reduction
    K = 7  # SpatialAttention default kernel size

    key = jax.random.PRNGKey(0)
    k0, k1, k2, k3 = jax.random.split(key, 4)

    x = jax.random.normal(k0, (B, C, H, W), dtype=jnp.float32)

    # deterministic, kaiming-ish scaled weights (Conv2d 1x1 no-bias; Conv2d KxK with bias)
    w1 = jax.random.normal(k1, (Cr, C), dtype=jnp.float32) * math.sqrt(2.0 / C)
    w2 = jax.random.normal(k2, (C, Cr), dtype=jnp.float32) * math.sqrt(2.0 / Cr)
    conv_w = jax.random.normal(k3, (2, K, K), dtype=jnp.float32) * math.sqrt(2.0 / (2 * K * K))
    conv_b = jnp.zeros((1,), dtype=jnp.float32)

    out = jax.block_until_ready(cbam_block(x, w1, w2, conv_w, conv_b))
    ref = jax.block_until_ready(cbam_reference(x, w1, w2, conv_w, conv_b))

    assert out.shape == (B, C, H, W)
    err = float(jnp.max(jnp.abs(out - ref)))
    assert jnp.allclose(out, ref, atol=1e-3, rtol=1e-3), err
    print("KERNEL_OK")
</pallas_src>

<mosaic_0001>
module attributes {stable_mosaic.version = 11 : i64} {
  func.func @_cbam_kernel(%arg0: i32, %arg1: memref<1x32x256xf32, #tpu.memory_space<vmem>>, %arg2: memref<32x2xf32, #tpu.memory_space<vmem>>, %arg3: memref<32x2xf32, #tpu.memory_space<vmem>>, %arg4: memref<98xf32, #tpu.memory_space<smem>>, %arg5: memref<1xf32, #tpu.memory_space<smem>>, %arg6: memref<1x32x256xf32, #tpu.memory_space<vmem>>, %arg7: memref<2x512xf32, #tpu.memory_space<vmem>>) attributes {dimension_semantics = [#tpu.dimension_semantics<parallel>], iteration_bounds = array<i64: 2>, scalar_prefetch = 0 : i64, scratch_operands = 1 : i64, tpu.core_type = #tpu.core_type<tc>, window_params = [{transform_indices = @transform_0, window_bounds = array<i64: 1, 32, 256>}, {pipeline_mode = #tpu.pipeline_mode<synchronous>, transform_indices = @transform_1, window_bounds = array<i64: 32, 2>}, {pipeline_mode = #tpu.pipeline_mode<synchronous>, transform_indices = @transform_2, window_bounds = array<i64: 32, 2>}, {transform_indices = @transform_3, window_bounds = array<i64: 98>}, {transform_indices = @transform_4, window_bounds = array<i64: 1>}, {transform_indices = @transform_5, window_bounds = array<i64: 1, 32, 256>}]} {
    %c0 = arith.constant 0 : index
    %c0_0 = arith.constant 0 : index
    %c0_1 = arith.constant 0 : index
    %0 = vector.load %arg1[%c0, %c0_0, %c0_1] : memref<1x32x256xf32, #tpu.memory_space<vmem>>, vector<1x32x256xf32>
    %1 = vector.shape_cast %0 : vector<1x32x256xf32> to vector<32x256xf32>
    %cst = arith.constant dense<0xFF800000> : vector<32xf32>
    %2 = vector.multi_reduction <maximumf>, %1, %cst [1] : vector<32x256xf32> to vector<32xf32>
    %3 = vector.shape_cast %2 : vector<32xf32> to vector<32x1xf32>
    %cst_2 = arith.constant dense<0.000000e+00> : vector<32xf32>
    %4 = vector.multi_reduction <add>, %1, %cst_2 [1] : vector<32x256xf32> to vector<32xf32>
    %5 = vector.shape_cast %4 : vector<32xf32> to vector<32x1xf32>
    %cst_3 = arith.constant 3.906250e-03 : f32
    %6 = vector.broadcast %cst_3 : f32 to vector<32x1xf32>
    %7 = arith.mulf %5, %6 : vector<32x1xf32>
    %c0_4 = arith.constant 0 : index
    %c0_5 = arith.constant 0 : index
    %8 = vector.load %arg2[%c0_4, %c0_5] : memref<32x2xf32, #tpu.memory_space<vmem>>, vector<32x2xf32>
    %c0_6 = arith.constant 0 : index
    %c0_7 = arith.constant 0 : index
    %9 = vector.load %arg3[%c0_6, %c0_7] : memref<32x2xf32, #tpu.memory_space<vmem>>, vector<32x2xf32>
    %10 = vector.broadcast %3 : vector<32x1xf32> to vector<32x2xf32>
    %11 = arith.mulf %8, %10 : vector<32x2xf32>
    %cst_8 = arith.constant dense<0.000000e+00> : vector<2xf32>
    %12 = vector.multi_reduction <add>, %11, %cst_8 [0] : vector<32x2xf32> to vector<2xf32>
    %13 = vector.shape_cast %12 : vector<2xf32> to vector<1x2xf32>
    %cst_9 = arith.constant 0.000000e+00 : f32
    %14 = vector.broadcast %cst_9 : f32 to vector<1x2xf32>
    %15 = arith.maximumf %13, %14 : vector<1x2xf32>
    %16 = vector.broadcast %15 : vector<1x2xf32> to vector<32x2xf32>
    %17 = arith.mulf %9, %16 : vector<32x2xf32>
    %cst_10 = arith.constant dense<0.000000e+00> : vector<32xf32>
    %18 = vector.multi_reduction <add>, %17, %cst_10 [1] : vector<32x2xf32> to vector<32xf32>
    %19 = vector.shape_cast %18 : vector<32xf32> to vector<32x1xf32>
    %20 = vector.broadcast %7 : vector<32x1xf32> to vector<32x2xf32>
    %21 = arith.mulf %8, %20 : vector<32x2xf32>
    %cst_11 = arith.constant dense<0.000000e+00> : vector<2xf32>
    %22 = vector.multi_reduction <add>, %21, %cst_11 [0] : vector<32x2xf32> to vector<2xf32>
    %23 = vector.shape_cast %22 : vector<2xf32> to vector<1x2xf32>
    %cst_12 = arith.constant 0.000000e+00 : f32
    %24 = vector.broadcast %cst_12 : f32 to vector<1x2xf32>
    %25 = arith.maximumf %23, %24 : vector<1x2xf32>
    %26 = vector.broadcast %25 : vector<1x2xf32> to vector<32x2xf32>
    %27 = arith.mulf %9, %26 : vector<32x2xf32>
    %cst_13 = arith.constant dense<0.000000e+00> : vector<32xf32>
    %28 = vector.multi_reduction <add>, %27, %cst_13 [1] : vector<32x2xf32> to vector<32xf32>
    %29 = vector.shape_cast %28 : vector<32xf32> to vector<32x1xf32>
    %30 = arith.addf %19, %29 : vector<32x1xf32>
    %31 = arith.negf %30 : vector<32x1xf32>
    %32 = math.exp %31 : vector<32x1xf32>
    %cst_14 = arith.constant 1.000000e+00 : f32
    %33 = vector.broadcast %cst_14 : f32 to vector<32x1xf32>
    %34 = arith.addf %33, %32 : vector<32x1xf32>
    %35 = arith.divf %33, %34 : vector<32x1xf32>
    %36 = vector.broadcast %35 : vector<32x1xf32> to vector<32x256xf32>
    %37 = arith.mulf %1, %36 : vector<32x256xf32>
    %cst_15 = arith.constant dense<0xFF800000> : vector<256xf32>
    %38 = vector.multi_reduction <maximumf>, %37, %cst_15 [0] : vector<32x256xf32> to vector<256xf32>
    %39 = vector.shape_cast %38 : vector<256xf32> to vector<1x256xf32>
    %cst_16 = arith.constant dense<0.000000e+00> : vector<256xf32>
    %40 = vector.multi_reduction <add>, %37, %cst_16 [0] : vector<32x256xf32> to vector<256xf32>
    %41 = vector.shape_cast %40 : vector<256xf32> to vector<1x256xf32>
    %cst_17 = arith.constant 3.125000e-02 : f32
    %42 = vector.broadcast %cst_17 : f32 to vector<1x256xf32>
    %43 = arith.mulf %41, %42 : vector<1x256xf32>
    %cst_18 = arith.constant 0.000000e+00 : f32
    %44 = vector.broadcast %cst_18 : f32 to vector<2x512xf32>
    %c0_19 = arith.constant 0 : index
    %c0_20 = arith.constant 0 : index
    %45 = vector.load %arg7[%c0_19, %c0_20] : memref<2x512xf32, #tpu.memory_space<vmem>>, vector<2x512xf32>
    tpu.vector_store %arg7[%c0_19, %c0_20], %44 {strides = array<i32>} : memref<2x512xf32, #tpu.memory_space<vmem>>, vector<2x512xf32>,
    %c0_21 = arith.constant 0 : index
    %c128 = arith.constant 128 : index
    %46 = vector.load %arg7[%c0_21, %c128] : memref<2x512xf32, #tpu.memory_space<vmem>>, vector<1x256xf32>
    tpu.vector_store %arg7[%c0_21, %c128], %39 {strides = array<i32>} : memref<2x512xf32, #tpu.memory_space<vmem>>, vector<1x256xf32>,
    %c1 = arith.constant 1 : index
    %c128_22 = arith.constant 128 : index
    %47 = vector.load %arg7[%c1, %c128_22] : memref<2x512xf32, #tpu.memory_space<vmem>>, vector<1x256xf32>
    tpu.vector_store %arg7[%c1, %c128_22], %43 {strides = array<i32>} : memref<2x512xf32, #tpu.memory_space<vmem>>, vector<1x256xf32>,
    %c0_23 = arith.constant 0 : index
    %48 = memref.load %arg4[%c0_23] : memref<98xf32, #tpu.memory_space<smem>>
    %c1_24 = arith.constant 1 : index
    %49 = memref.load %arg4[%c1_24] : memref<98xf32, #tpu.memory_space<smem>>
    %c2 = arith.constant 2 : index
    %50 = memref.load %arg4[%c2] : memref<98xf32, #tpu.memory_space<smem>>
    %c3 = arith.constant 3 : index
    %51 = memref.load %arg4[%c3] : memref<98xf32, #tpu.memory_space<smem>>
    %c4 = arith.constant 4 : index
    %52 = memref.load %arg4[%c4] : memref<98xf32, #tpu.memory_space<smem>>
    %c5 = arith.constant 5 : index
    %53 = memref.load %arg4[%c5] : memref<98xf32, #tpu.memory_space<smem>>
    %c6 = arith.constant 6 : index
    %54 = memref.load %arg4[%c6] : memref<98xf32, #tpu.memory_space<smem>>
    %c7 = arith.constant 7 : index
    %55 = memref.load %arg4[%c7] : memref<98xf32, #tpu.memory_space<smem>>
    %c8 = arith.constant 8 : index
    %56 = memref.load %arg4[%c8] : memref<98xf32, #tpu.memory_space<smem>>
    %c9 = arith.constant 9 : index
    %57 = memref.load %arg4[%c9] : memref<98xf32, #tpu.memory_space<smem>>
    %c10 = arith.constant 10 : index
    %58 = memref.load %arg4[%c10] : memref<98xf32, #tpu.memory_space<smem>>
    %c11 = arith.constant 11 : index
    %59 = memref.load %arg4[%c11] : memref<98xf32, #tpu.memory_space<smem>>
    %c12 = arith.constant 12 : index
    %60 = memref.load %arg4[%c12] : memref<98xf32, #tpu.memory_space<smem>>
    %c13 = arith.constant 13 : index
    %61 = memref.load %arg4[%c13] : memref<98xf32, #tpu.memory_space<smem>>
    %c14 = arith.constant 14 : index
    %62 = memref.load %arg4[%c14] : memref<98xf32, #tpu.memory_space<smem>>
    %c15 = arith.constant 15 : index
    %63 = memref.load %arg4[%c15] : memref<98xf32, #tpu.memory_space<smem>>
    %c16 = arith.constant 16 : index
    %64 = memref.load %arg4[%c16] : memref<98xf32, #tpu.memory_space<smem>>
    %c17 = arith.constant 17 : index
    %65 = memref.load %arg4[%c17] : memref<98xf32, #tpu.memory_space<smem>>
    %c18 = arith.constant 18 : index
    %66 = memref.load %arg4[%c18] : memref<98xf32, #tpu.memory_space<smem>>
    %c19 = arith.constant 19 : index
    %67 = memref.load %arg4[%c19] : memref<98xf32, #tpu.memory_space<smem>>
    %c20 = arith.constant 20 : index
    %68 = memref.load %arg4[%c20] : memref<98xf32, #tpu.memory_space<smem>>
    %c21 = arith.constant 21 : index
    %69 = memref.load %arg4[%c21] : memref<98xf32, #tpu.memory_space<smem>>
    %c22 = arith.constant 22 : index
    %70 = memref.load %arg4[%c22] : memref<98xf32, #tpu.memory_space<smem>>
    %c23 = arith.constant 23 : index
    %71 = memref.load %arg4[%c23] : memref<98xf32, #tpu.memory_space<smem>>
    %c24 = arith.constant 24 : index
    %72 = memref.load %arg4[%c24] : memref<98xf32, #tpu.memory_space<smem>>
    %c25 = arith.constant 25 : index
    %73 = memref.load %arg4[%c25] : memref<98xf32, #tpu.memory_space<smem>>
    %c26 = arith.constant 26 : index
    %74 = memref.load %arg4[%c26] : memref<98xf32, #tpu.memory_space<smem>>
    %c27 = arith.constant 27 : index
    %75 = memref.load %arg4[%c27] : memref<98xf32, #tpu.memory_space<smem>>
    %c28 = arith.constant 28 : index
    %76 = memref.load %arg4[%c28] : memref<98xf32, #tpu.memory_space<smem>>
    %c29 = arith.constant 29 : index
    %77 = memref.load %arg4[%c29] : memref<98xf32, #tpu.memory_space<smem>>
    %c30 = arith.constant 30 : index
    %78 = memref.load %arg4[%c30] : memref<98xf32, #tpu.memory_space<smem>>
    %c31 = arith.constant 31 : index
    %79 = memref.load %arg4[%c31] : memref<98xf32, #tpu.memory_space<smem>>
    %c32 = arith.constant 32 : index
    %80 = memref.load %arg4[%c32] : memref<98xf32, #tpu.memory_space<smem>>
    %c33 = arith.constant 33 : index
    %81 = memref.load %arg4[%c33] : memref<98xf32, #tpu.memory_space<smem>>
    %c34 = arith.constant 34 : index
    %82 = memref.load %arg4[%c34] : memref<98xf32, #tpu.memory_space<smem>>
    %c35 = arith.constant 35 : index
    %83 = memref.load %arg4[%c35] : memref<98xf32, #tpu.memory_space<smem>>
    %c36 = arith.constant 36 : index
    %84 = memref.load %arg4[%c36] : memref<98xf32, #tpu.memory_space<smem>>
    %c37 = arith.constant 37 : index
    %85 = memref.load %arg4[%c37] : memref<98xf32, #tpu.memory_space<smem>>
    %c38 = arith.constant 38 : index
    %86 = memref.load %arg4[%c38] : memref<98xf32, #tpu.memory_space<smem>>
    %c39 = arith.constant 39 : index
    %87 = memref.load %arg4[%c39] : memref<98xf32, #tpu.memory_space<smem>>
    %c40 = arith.constant 40 : index
    %88 = memref.load %arg4[%c40] : memref<98xf32, #tpu.memory_space<smem>>
    %c41 = arith.constant 41 : index
    %89 = memref.load %arg4[%c41] : memref<98xf32, #tpu.memory_space<smem>>
    %c42 = arith.constant 42 : index
    %90 = memref.load %arg4[%c42] : memref<98xf32, #tpu.memory_space<smem>>
    %c43 = arith.constant 43 : index
    %91 = memref.load %arg4[%c43] : memref<98xf32, #tpu.memory_space<smem>>
    %c44 = arith.constant 44 : index
    %92 = memref.load %arg4[%c44] : memref<98xf32, #tpu.memory_space<smem>>
    %c45 = arith.constant 45 : index
    %93 = memref.load %arg4[%c45] : memref<98xf32, #tpu.memory_space<smem>>
    %c46 = arith.constant 46 : index
    %94 = memref.load %arg4[%c46] : memref<98xf32, #tpu.memory_space<smem>>
    %c47 = arith.constant 47 : index
    %95 = memref.load %arg4[%c47] : memref<98xf32, #tpu.memory_space<smem>>
    %c48 = arith.constant 48 : index
    %96 = memref.load %arg4[%c48] : memref<98xf32, #tpu.memory_space<smem>>
    %c49 = arith.constant 49 : index
    %97 = memref.load %arg4[%c49] : memref<98xf32, #tpu.memory_space<smem>>
    %c50 = arith.constant 50 : index
    %98 = memref.load %arg4[%c50] : memref<98xf32, #tpu.memory_space<smem>>
    %c51 = arith.constant 51 : index
    %99 = memref.load %arg4[%c51] : memref<98xf32, #tpu.memory_space<smem>>
    %c52 = arith.constant 52 : index
    %100 = memref.load %arg4[%c52] : memref<98xf32, #tpu.memory_space<smem>>
    %c53 = arith.constant 53 : index
    %101 = memref.load %arg4[%c53] : memref<98xf32, #tpu.memory_space<smem>>
    %c54 = arith.constant 54 : index
    %102 = memref.load %arg4[%c54] : memref<98xf32, #tpu.memory_space<smem>>
    %c55 = arith.constant 55 : index
    %103 = memref.load %arg4[%c55] : memref<98xf32, #tpu.memory_space<smem>>
    %c56 = arith.constant 56 : index
    %104 = memref.load %arg4[%c56] : memref<98xf32, #tpu.memory_space<smem>>
    %c57 = arith.constant 57 : index
    %105 = memref.load %arg4[%c57] : memref<98xf32, #tpu.memory_space<smem>>
    %c58 = arith.constant 58 : index
    %106 = memref.load %arg4[%c58] : memref<98xf32, #tpu.memory_space<smem>>
    %c59 = arith.constant 59 : index
    %107 = memref.load %arg4[%c59] : memref<98xf32, #tpu.memory_space<smem>>
    %c60 = arith.constant 60 : index
    %108 = memref.load %arg4[%c60] : memref<98xf32, #tpu.memory_space<smem>>
    %c61 = arith.constant 61 : index
    %109 = memref.load %arg4[%c61] : memref<98xf32, #tpu.memory_space<smem>>
    %c62 = arith.constant 62 : index
    %110 = memref.load %arg4[%c62] : memref<98xf32, #tpu.memory_space<smem>>
    %c63 = arith.constant 63 : index
    %111 = memref.load %arg4[%c63] : memref<98xf32, #tpu.memory_space<smem>>
    %c64 = arith.constant 64 : index
    %112 = memref.load %arg4[%c64] : memref<98xf32, #tpu.memory_space<smem>>
    %c65 = arith.constant 65 : index
    %113 = memref.load %arg4[%c65] : memref<98xf32, #tpu.memory_space<smem>>
    %c66 = arith.constant 66 : index
    %114 = memref.load %arg4[%c66] : memref<98xf32, #tpu.memory_space<smem>>
    %c67 = arith.constant 67 : index
    %115 = memref.load %arg4[%c67] : memref<98xf32, #tpu.memory_space<smem>>
    %c68 = arith.constant 68 : index
    %116 = memref.load %arg4[%c68] : memref<98xf32, #tpu.memory_space<smem>>
    %c69 = arith.constant 69 : index
    %117 = memref.load %arg4[%c69] : memref<98xf32, #tpu.memory_space<smem>>
    %c70 = arith.constant 70 : index
    %118 = memref.load %arg4[%c70] : memref<98xf32, #tpu.memory_space<smem>>
    %c71 = arith.constant 71 : index
    %119 = memref.load %arg4[%c71] : memref<98xf32, #tpu.memory_space<smem>>
    %c72 = arith.constant 72 : index
    %120 = memref.load %arg4[%c72] : memref<98xf32, #tpu.memory_space<smem>>
    %c73 = arith.constant 73 : index
    %121 = memref.load %arg4[%c73] : memref<98xf32, #tpu.memory_space<smem>>
    %c74 = arith.constant 74 : index
    %122 = memref.load %arg4[%c74] : memref<98xf32, #tpu.memory_space<smem>>
    %c75 = arith.constant 75 : index
    %123 = memref.load %arg4[%c75] : memref<98xf32, #tpu.memory_space<smem>>
    %c76 = arith.constant 76 : index
    %124 = memref.load %arg4[%c76] : memref<98xf32, #tpu.memory_space<smem>>
    %c77 = arith.constant 77 : index
    %125 = memref.load %arg4[%c77] : memref<98xf32, #tpu.memory_space<smem>>
    %c78 = arith.constant 78 : index
    %126 = memref.load %arg4[%c78] : memref<98xf32, #tpu.memory_space<smem>>
    %c79 = arith.constant 79 : index
    %127 = memref.load %arg4[%c79] : memref<98xf32, #tpu.memory_space<smem>>
    %c80 = arith.constant 80 : index
    %128 = memref.load %arg4[%c80] : memref<98xf32, #tpu.memory_space<smem>>
    %c81 = arith.constant 81 : index
    %129 = memref.load %arg4[%c81] : memref<98xf32, #tpu.memory_space<smem>>
    %c82 = arith.constant 82 : index
    %130 = memref.load %arg4[%c82] : memref<98xf32, #tpu.memory_space<smem>>
    %c83 = arith.constant 83 : index
    %131 = memref.load %arg4[%c83] : memref<98xf32, #tpu.memory_space<smem>>
    %c84 = arith.constant 84 : index
    %132 = memref.load %arg4[%c84] : memref<98xf32, #tpu.memory_space<smem>>
    %c85 = arith.constant 85 : index
    %133 = memref.load %arg4[%c85] : memref<98xf32, #tpu.memory_space<smem>>
    %c86 = arith.constant 86 : index
    %134 = memref.load %arg4[%c86] : memref<98xf32, #tpu.memory_space<smem>>
    %c87 = arith.constant 87 : index
    %135 = memref.load %arg4[%c87] : memref<98xf32, #tpu.memory_space<smem>>
    %c88 = arith.constant 88 : index
    %136 = memref.load %arg4[%c88] : memref<98xf32, #tpu.memory_space<smem>>
    %c89 = arith.constant 89 : index
    %137 = memref.load %arg4[%c89] : memref<98xf32, #tpu.memory_space<smem>>
    %c90 = arith.constant 90 : index
    %138 = memref.load %arg4[%c90] : memref<98xf32, #tpu.memory_space<smem>>
    %c91 = arith.constant 91 : index
    %139 = memref.load %arg4[%c91] : memref<98xf32, #tpu.memory_space<smem>>
    %c92 = arith.constant 92 : index
    %140 = memref.load %arg4[%c92] : memref<98xf32, #tpu.memory_space<smem>>
    %c93 = arith.constant 93 : index
    %141 = memref.load %arg4[%c93] : memref<98xf32, #tpu.memory_space<smem>>
    %c94 = arith.constant 94 : index
    %142 = memref.load %arg4[%c94] : memref<98xf32, #tpu.memory_space<smem>>
    %c95 = arith.constant 95 : index
    %143 = memref.load %arg4[%c95] : memref<98xf32, #tpu.memory_space<smem>>
    %c96 = arith.constant 96 : index
    %144 = memref.load %arg4[%c96] : memref<98xf32, #tpu.memory_space<smem>>
    %c97 = arith.constant 97 : index
    %145 = memref.load %arg4[%c97] : memref<98xf32, #tpu.memory_space<smem>>
    %c0_25 = arith.constant 0 : index
    %146 = memref.load %arg5[%c0_25] : memref<1xf32, #tpu.memory_space<smem>>
    %147 = tpu.iota {dimensions = array<i32: 1>} : vector<1x256xi32>
    %c16_i32 = arith.constant 16 : i32
    %c0_i32 = arith.constant 0 : i32
    %148 = arith.cmpi eq, %c16_i32, %c0_i32 : i32
    %c1_i32 = arith.constant 1 : i32
    %149 = arith.select %148, %c1_i32, %c16_i32 : i32
    %150 = vector.broadcast %149 : i32 to vector<1x256xi32>
    %151 = arith.remsi %147, %150 : vector<1x256xi32>
    %c0_i32_26 = arith.constant 0 : i32
    %152 = vector.broadcast %c0_i32_26 : i32 to vector<1x256xi32>
    %153 = arith.cmpi ne, %151, %152 : vector<1x256xi32>
    %c0_i32_27 = arith.constant 0 : i32
    %154 = vector.broadcast %c0_i32_27 : i32 to vector<1x256xi32>
    %155 = arith.cmpi slt, %151, %154 : vector<1x256xi32>
    %c0_i32_28 = arith.constant 0 : i32
    %156 = arith.cmpi slt, %149, %c0_i32_28 : i32
    %157 = vector.broadcast %156 : i1 to vector<1x256xi1>
    %158 = vector.broadcast %157 : vector<1x256xi1> to vector<1x256xi1>
    %159 = arith.xori %155, %158 : vector<1x256xi1>
    %160 = arith.andi %159, %153 : vector<1x256xi1>
    %161 = vector.broadcast %149 : i32 to vector<1x256xi32>
    %162 = arith.addi %151, %161 : vector<1x256xi32>
    %163 = arith.select %160, %162, %151 : vector<1x256xi1>, vector<1x256xi32>
    %cst_29 = arith.constant 0.000000e+00 : f32
    %164 = vector.broadcast %cst_29 : f32 to vector<1x256xf32>
    %cst_30 = arith.constant 0.000000e+00 : f32
    %165 = vector.broadcast %cst_30 : f32 to vector<1x256xf32>
    %c0_31 = arith.constant 0 : index
    %c77_32 = arith.constant 77 : index
    %166 = vector.load %arg7[%c0_31, %c77_32] : memref<2x512xf32, #tpu.memory_space<vmem>>, vector<1x256xf32>
    %167 = vector.broadcast %48 : f32 to vector<1x256xf32>
    %168 = arith.mulf %167, %166 : vector<1x256xf32>
    %169 = arith.addf %165, %168 : vector<1x256xf32>
    %c0_33 = arith.constant 0 : index
    %c93_34 = arith.constant 93 : index
    %170 = vector.load %arg7[%c0_33, %c93_34] : memref<2x512xf32, #tpu.memory_space<vmem>>, vector<1x256xf32>
    %171 = vector.broadcast %55 : f32 to vector<1x256xf32>
    %172 = arith.mulf %171, %170 : vector<1x256xf32>
    %173 = arith.addf %169, %172 : vector<1x256xf32>
    %c0_35 = arith.constant 0 : index
    %c109 = arith.constant 109 : index
    %174 = vector.load %arg7[%c0_35, %c109] : memref<2x512xf32, #tpu.memory_space<vmem>>, vector<1x256xf32>
    %175 = vector.broadcast %62 : f32 to vector<1x256xf32>
    %176 = arith.mulf %175, %174 : vector<1x256xf32>
    %177 = arith.addf %173, %176 : vector<1x256xf32>
    %c0_36 = arith.constant 0 : index
    %c125 = arith.constant 125 : index
    %178 = vector.load %arg7[%c0_36, %c125] : memref<2x512xf32, #tpu.memory_space<vmem>>, vector<1x256xf32>
    %179 = vector.broadcast %69 : f32 to vector<1x256xf32>
    %180 = arith.mulf %179, %178 : vector<1x256xf32>
    %181 = arith.addf %177, %180 : vector<1x256xf32>
    %c0_37 = arith.constant 0 : index
    %c141 = arith.constant 141 : index
    %182 = vector.load %arg7[%c0_37, %c141] : memref<2x512xf32, #tpu.memory_space<vmem>>, vector<1x256xf32>
    %183 = vector.broadcast %76 : f32 to vector<1x256xf32>
    %184 = arith.mulf %183, %182 : vector<1x256xf32>
    %185 = arith.addf %181, %184 : vector<1x256xf32>
    %c0_38 = arith.constant 0 : index
    %c157 = arith.constant 157 : index
    %186 = vector.load %arg7[%c0_38, %c157] : memref<2x512xf32, #tpu.memory_space<vmem>>, vector<1x256xf32>
    %187 = vector.broadcast %83 : f32 to vector<1x256xf32>
    %188 = arith.mulf %187, %186 : vector<1x256xf32>
    %189 = arith.addf %185, %188 : vector<1x256xf32>
    %c0_39 = arith.constant 0 : index
    %c173 = arith.constant 173 : index
    %190 = vector.load %arg7[%c0_39, %c173] : memref<2x512xf32, #tpu.memory_space<vmem>>, vector<1x256xf32>
    %191 = vector.broadcast %90 : f32 to vector<1x256xf32>
    %192 = arith.mulf %191, %190 : vector<1x256xf32>
    %193 = arith.addf %189, %192 : vector<1x256xf32>
    %c1_40 = arith.constant 1 : index
    %c77_41 = arith.constant 77 : index
    %194 = vector.load %arg7[%c1_40, %c77_41] : memref<2x512xf32, #tpu.memory_space<vmem>>, vector<1x256xf32>
    %195 = vector.broadcast %97 : f32 to vector<1x256xf32>
    %196 = arith.mulf %195, %194 : vector<1x256xf32>
    %197 = arith.addf %193, %196 : vector<1x256xf32>
    %c1_42 = arith.constant 1 : index
    %c93_43 = arith.constant 93 : index
    %198 = vector.load %arg7[%c1_42, %c93_43] : memref<2x512xf32, #tpu.memory_space<vmem>>, vector<1x256xf32>
    %199 = vector.broadcast %104 : f32 to vector<1x256xf32>
    %200 = arith.mulf %199, %198 : vector<1x256xf32>
    %201 = arith.addf %197, %200 : vector<1x256xf32>
    %c1_44 = arith.constant 1 : index
    %c109_45 = arith.constant 109 : index
    %202 = vector.load %arg7[%c1_44, %c109_45] : memref<2x512xf32, #tpu.memory_space<vmem>>, vector<1x256xf32>
    %203 = vector.broadcast %111 : f32 to vector<1x256xf32>
    %204 = arith.mulf %203, %202 : vector<1x256xf32>
    %205 = arith.addf %201, %204 : vector<1x256xf32>
    %c1_46 = arith.constant 1 : index
    %c125_47 = arith.constant 125 : index
    %206 = vector.load %arg7[%c1_46, %c125_47] : memref<2x512xf32, #tpu.memory_space<vmem>>, vector<1x256xf32>
    %207 = vector.broadcast %118 : f32 to vector<1x256xf32>
    %208 = arith.mulf %207, %206 : vector<1x256xf32>
    %209 = arith.addf %205, %208 : vector<1x256xf32>
    %c1_48 = arith.constant 1 : index
    %c141_49 = arith.constant 141 : index
    %210 = vector.load %arg7[%c1_48, %c141_49] : memref<2x512xf32, #tpu.memory_space<vmem>>, vector<1x256xf32>
    %211 = vector.broadcast %125 : f32 to vector<1x256xf32>
    %212 = arith.mulf %211, %210 : vector<1x256xf32>
    %213 = arith.addf %209, %212 : vector<1x256xf32>
    %c1_50 = arith.constant 1 : index
    %c157_51 = arith.constant 157 : index
    %214 = vector.load %arg7[%c1_50, %c157_51] : memref<2x512xf32, #tpu.memory_space<vmem>>, vector<1x256xf32>
    %215 = vector.broadcast %132 : f32 to vector<1x256xf32>
    %216 = arith.mulf %215, %214 : vector<1x256xf32>
    %217 = arith.addf %213, %216 : vector<1x256xf32>
    %c1_52 = arith.constant 1 : index
    %c173_53 = arith.constant 173 : index
    %218 = vector.load %arg7[%c1_52, %c173_53] : memref<2x512xf32, #tpu.memory_space<vmem>>, vector<1x256xf32>
    %219 = vector.broadcast %139 : f32 to vector<1x256xf32>
    %220 = arith.mulf %219, %218 : vector<1x256xf32>
    %221 = arith.addf %217, %220 : vector<1x256xf32>
    %c-3_i32 = arith.constant -3 : i32
    %222 = vector.broadcast %c-3_i32 : i32 to vector<1x256xi32>
    %223 = arith.addi %163, %222 : vector<1x256xi32>
    %c0_i32_54 = arith.constant 0 : i32
    %224 = vector.broadcast %c0_i32_54 : i32 to vector<1x256xi32>
    %225 = arith.cmpi sge, %223, %224 : vector<1x256xi32>
    %c16_i32_55 = arith.constant 16 : i32
    %226 = vector.broadcast %c16_i32_55 : i32 to vector<1x256xi32>
    %227 = arith.cmpi slt, %223, %226 : vector<1x256xi32>
    %228 = arith.andi %225, %227 : vector<1x256xi1>
    %cst_56 = arith.constant 0.000000e+00 : f32
    %229 = vector.broadcast %cst_56 : f32 to vector<1x256xf32>
    %230 = arith.select %228, %221, %229 : vector<1x256xi1>, vector<1x256xf32>
    %231 = arith.addf %164, %230 : vector<1x256xf32>
    %cst_57 = arith.constant 0.000000e+00 : f32
    %232 = vector.broadcast %cst_57 : f32 to vector<1x256xf32>
    %c0_58 = arith.constant 0 : index
    %c78_59 = arith.constant 78 : index
    %233 = vector.load %arg7[%c0_58, %c78_59] : memref<2x512xf32, #tpu.memory_space<vmem>>, vector<1x256xf32>
    %234 = vector.broadcast %49 : f32 to vector<1x256xf32>
    %235 = arith.mulf %234, %233 : vector<1x256xf32>
    %236 = arith.addf %232, %235 : vector<1x256xf32>
    %c0_60 = arith.constant 0 : index
    %c94_61 = arith.constant 94 : index
    %237 = vector.load %arg7[%c0_60, %c94_61] : memref<2x512xf32, #tpu.memory_space<vmem>>, vector<1x256xf32>
    %238 = vector.broadcast %56 : f32 to vector<1x256xf32>
    %239 = arith.mulf %238, %237 : vector<1x256xf32>
    %240 = arith.addf %236, %239 : vector<1x256xf32>
    %c0_62 = arith.constant 0 : index
    %c110 = arith.constant 110 : index
    %241 = vector.load %arg7[%c0_62, %c110] : memref<2x512xf32, #tpu.memory_space<vmem>>, vector<1x256xf32>
    %242 = vector.broadcast %63 : f32 to vector<1x256xf32>
    %243 = arith.mulf %242, %241 : vector<1x256xf32>
    %244 = arith.addf %240, %243 : vector<1x256xf32>
    %c0_63 = arith.constant 0 : index
    %c126 = arith.constant 126 : index
    %245 = vector.load %arg7[%c0_63, %c126] : memref<2x512xf32, #tpu.memory_space<vmem>>, vector<1x256xf32>
    %246 = vector.broadcast %70 : f32 to vector<1x256xf32>
    %247 = arith.mulf %246, %245 : vector<1x256xf32>
    %248 = arith.addf %244, %247 : vector<1x256xf32>
    %c0_64 = arith.constant 0 : index
    %c142 = arith.constant 142 : index
    %249 = vector.load %arg7[%c0_64, %c142] : memref<2x512xf32, #tpu.memory_space<vmem>>, vector<1x256xf32>
    %250 = vector.broadcast %77 : f32 to vector<1x256xf32>
    %251 = arith.mulf %250, %249 : vector<1x256xf32>
    %252 = arith.addf %248, %251 : vector<1x256xf32>
    %c0_65 = arith.constant 0 : index
    %c158 = arith.constant 158 : index
    %253 = vector.load %arg7[%c0_65, %c158] : memref<2x512xf32, #tpu.memory_space<vmem>>, vector<1x256xf32>
    %254 = vector.broadcast %84 : f32 to vector<1x256xf32>
    %255 = arith.mulf %254, %253 : vector<1x256xf32>
    %256 = arith.addf %252, %255 : vector<1x256xf32>
    %c0_66 = arith.constant 0 : index
    %c174 = arith.constant 174 : index
    %257 = vector.load %arg7[%c0_66, %c174] : memref<2x512xf32, #tpu.memory_space<vmem>>, vector<1x256xf32>
    %258 = vector.broadcast %91 : f32 to vector<1x256xf32>
    %259 = arith.mulf %258, %257 : vector<1x256xf32>
    %260 = arith.addf %256, %259 : vector<1x256xf32>
    %c1_67 = arith.constant 1 : index
    %c78_68 = arith.constant 78 : index
    %261 = vector.load %arg7[%c1_67, %c78_68] : memref<2x512xf32, #tpu.memory_space<vmem>>, vector<1x256xf32>
    %262 = vector.broadcast %98 : f32 to vector<1x256xf32>
    %263 = arith.mulf %262, %261 : vector<1x256xf32>
    %264 = arith.addf %260, %263 : vector<1x256xf32>
    %c1_69 = arith.constant 1 : index
    %c94_70 = arith.constant 94 : index
    %265 = vector.load %arg7[%c1_69, %c94_70] : memref<2x512xf32, #tpu.memory_space<vmem>>, vector<1x256xf32>
    %266 = vector.broadcast %105 : f32 to vector<1x256xf32>
    %267 = arith.mulf %266, %265 : vector<1x256xf32>
    %268 = arith.addf %264, %267 : vector<1x256xf32>
    %c1_71 = arith.constant 1 : index
    %c110_72 = arith.constant 110 : index
    %269 = vector.load %arg7[%c1_71, %c110_72] : memref<2x512xf32, #tpu.memory_space<vmem>>, vector<1x256xf32>
    %270 = vector.broadcast %112 : f32 to vector<1x256xf32>
    %271 = arith.mulf %270, %269 : vector<1x256xf32>
    %272 = arith.addf %268, %271 : vector<1x256xf32>
    %c1_73 = arith.constant 1 : index
    %c126_74 = arith.constant 126 : index
    %273 = vector.load %arg7[%c1_73, %c126_74] : memref<2x512xf32, #tpu.memory_space<vmem>>, vector<1x256xf32>
    %274 = vector.broadcast %119 : f32 to vector<1x256xf32>
    %275 = arith.mulf %274, %273 : vector<1x256xf32>
    %276 = arith.addf %272, %275 : vector<1x256xf32>
    %c1_75 = arith.constant 1 : index
    %c142_76 = arith.constant 142 : index
    %277 = vector.load %arg7[%c1_75, %c142_76] : memref<2x512xf32, #tpu.memory_space<vmem>>, vector<1x256xf32>
    %278 = vector.broadcast %126 : f32 to vector<1x256xf32>
    %279 = arith.mulf %278, %277 : vector<1x256xf32>
    %280 = arith.addf %276, %279 : vector<1x256xf32>
    %c1_77 = arith.constant 1 : index
    %c158_78 = arith.constant 158 : index
    %281 = vector.load %arg7[%c1_77, %c158_78] : memref<2x512xf32, #tpu.memory_space<vmem>>, vector<1x256xf32>
    %282 = vector.broadcast %133 : f32 to vector<1x256xf32>
    %283 = arith.mulf %282, %281 : vector<1x256xf32>
    %284 = arith.addf %280, %283 : vector<1x256xf32>
    %c1_79 = arith.constant 1 : index
    %c174_80 = arith.constant 174 : index
    %285 = vector.load %arg7[%c1_79, %c174_80] : memref<2x512xf32, #tpu.memory_space<vmem>>, vector<1x256xf32>
    %286 = vector.broadcast %140 : f32 to vector<1x256xf32>
    %287 = arith.mulf %286, %285 : vector<1x256xf32>
    %288 = arith.addf %284, %287 : vector<1x256xf32>
    %c-2_i32 = arith.constant -2 : i32
    %289 = vector.broadcast %c-2_i32 : i32 to vector<1x256xi32>
    %290 = arith.addi %163, %289 : vector<1x256xi32>
    %c0_i32_81 = arith.constant 0 : i32
    %291 = vector.broadcast %c0_i32_81 : i32 to vector<1x256xi32>
    %292 = arith.cmpi sge, %290, %291 : vector<1x256xi32>
    %c16_i32_82 = arith.constant 16 : i32
    %293 = vector.broadcast %c16_i32_82 : i32 to vector<1x256xi32>
    %294 = arith.cmpi slt, %290, %293 : vector<1x256xi32>
    %295 = arith.andi %292, %294 : vector<1x256xi1>
    %cst_83 = arith.constant 0.000000e+00 : f32
    %296 = vector.broadcast %cst_83 : f32 to vector<1x256xf32>
    %297 = arith.select %295, %288, %296 : vector<1x256xi1>, vector<1x256xf32>
    %298 = arith.addf %231, %297 : vector<1x256xf32>
    %cst_84 = arith.constant 0.000000e+00 : f32
    %299 = vector.broadcast %cst_84 : f32 to vector<1x256xf32>
    %c0_85 = arith.constant 0 : index
    %c79_86 = arith.constant 79 : index
    %300 = vector.load %arg7[%c0_85, %c79_86] : memref<2x512xf32, #tpu.memory_space<vmem>>, vector<1x256xf32>
    %301 = vector.broadcast %50 : f32 to vector<1x256xf32>
    %302 = arith.mulf %301, %300 : vector<1x256xf32>
    %303 = arith.addf %299, %302 : vector<1x256xf32>
    %c0_87 = arith.constant 0 : index
    %c95_88 = arith.constant 95 : index
    %304 = vector.load %arg7[%c0_87, %c95_88] : memref<2x512xf32, #tpu.memory_space<vmem>>, vector<1x256xf32>
    %305 = vector.broadcast %57 : f32 to vector<1x256xf32>
    %306 = arith.mulf %305, %304 : vector<1x256xf32>
    %307 = arith.addf %303, %306 : vector<1x256xf32>
    %c0_89 = arith.constant 0 : index
    %c111 = arith.constant 111 : index
    %308 = vector.load %arg7[%c0_89, %c111] : memref<2x512xf32, #tpu.memory_space<vmem>>, vector<1x256xf32>
    %309 = vector.broadcast %64 : f32 to vector<1x256xf32>
    %310 = arith.mulf %309, %308 : vector<1x256xf32>
    %311 = arith.addf %307, %310 : vector<1x256xf32>
    %c0_90 = arith.constant 0 : index
    %c127 = arith.constant 127 : index
    %312 = vector.load %arg7[%c0_90, %c127] : memref<2x512xf32, #tpu.memory_space<vmem>>, vector<1x256xf32>
    %313 = vector.broadcast %71 : f32 to vector<1x256xf32>
    %314 = arith.mulf %313, %312 : vector<1x256xf32>
    %315 = arith.addf %311, %314 : vector<1x256xf32>
    %c0_91 = arith.constant 0 : index
    %c143 = arith.constant 143 : index
    %316 = vector.load %arg7[%c0_91, %c143] : memref<2x512xf32, #tpu.memory_space<vmem>>, vector<1x256xf32>
    %317 = vector.broadcast %78 : f32 to vector<1x256xf32>
    %318 = arith.mulf %317, %316 : vector<1x256xf32>
    %319 = arith.addf %315, %318 : vector<1x256xf32>
    %c0_92 = arith.constant 0 : index
    %c159 = arith.constant 159 : index
    %320 = vector.load %arg7[%c0_92, %c159] : memref<2x512xf32, #tpu.memory_space<vmem>>, vector<1x256xf32>
    %321 = vector.broadcast %85 : f32 to vector<1x256xf32>
    %322 = arith.mulf %321, %320 : vector<1x256xf32>
    %323 = arith.addf %319, %322 : vector<1x256xf32>
    %c0_93 = arith.constant 0 : index
    %c175 = arith.constant 175 : index
    %324 = vector.load %arg7[%c0_93, %c175] : memref<2x512xf32, #tpu.memory_space<vmem>>, vector<1x256xf32>
    %325 = vector.broadcast %92 : f32 to vector<1x256xf32>
    %326 = arith.mulf %325, %324 : vector<1x256xf32>
    %327 = arith.addf %323, %326 : vector<1x256xf32>
    %c1_94 = arith.constant 1 : index
    %c79_95 = arith.constant 79 : index
    %328 = vector.load %arg7[%c1_94, %c79_95] : memref<2x512xf32, #tpu.memory_space<vmem>>, vector<1x256xf32>
    %329 = vector.broadcast %99 : f32 to vector<1x256xf32>
    %330 = arith.mulf %329, %328 : vector<1x256xf32>
    %331 = arith.addf %327, %330 : vector<1x256xf32>
    %c1_96 = arith.constant 1 : index
    %c95_97 = arith.constant 95 : index
    %332 = vector.load %arg7[%c1_96, %c95_97] : memref<2x512xf32, #tpu.memory_space<vmem>>, vector<1x256xf32>
    %333 = vector.broadcast %106 : f32 to vector<1x256xf32>
    %334 = arith.mulf %333, %332 : vector<1x256xf32>
    %335 = arith.addf %331, %334 : vector<1x256xf32>
    %c1_98 = arith.constant 1 : index
    %c111_99 = arith.constant 111 : index
    %336 = vector.load %arg7[%c1_98, %c111_99] : memref<2x512xf32, #tpu.memory_space<vmem>>, vector<1x256xf32>
    %337 = vector.broadcast %113 : f32 to vector<1x256xf32>
    %338 = arith.mulf %337, %336 : vector<1x256xf32>
    %339 = arith.addf %335, %338 : vector<1x256xf32>
    %c1_100 = arith.constant 1 : index
    %c127_101 = arith.constant 127 : index
    %340 = vector.load %arg7[%c1_100, %c127_101] : memref<2x512xf32, #tpu.memory_space<vmem>>, vector<1x256xf32>
    %341 = vector.broadcast %120 : f32 to vector<1x256xf32>
    %342 = arith.mulf %341, %340 : vector<1x256xf32>
    %343 = arith.addf %339, %342 : vector<1x256xf32>
    %c1_102 = arith.constant 1 : index
    %c143_103 = arith.constant 143 : index
    %344 = vector.load %arg7[%c1_102, %c143_103] : memref<2x512xf32, #tpu.memory_space<vmem>>, vector<1x256xf32>
    %345 = vector.broadcast %127 : f32 to vector<1x256xf32>
    %346 = arith.mulf %345, %344 : vector<1x256xf32>
    %347 = arith.addf %343, %346 : vector<1x256xf32>
    %c1_104 = arith.constant 1 : index
    %c159_105 = arith.constant 159 : index
    %348 = vector.load %arg7[%c1_104, %c159_105] : memref<2x512xf32, #tpu.memory_space<vmem>>, vector<1x256xf32>
    %349 = vector.broadcast %134 : f32 to vector<1x256xf32>
    %350 = arith.mulf %349, %348 : vector<1x256xf32>
    %351 = arith.addf %347, %350 : vector<1x256xf32>
    %c1_106 = arith.constant 1 : index
    %c175_107 = arith.constant 175 : index
    %352 = vector.load %arg7[%c1_106, %c175_107] : memref<2x512xf32, #tpu.memory_space<vmem>>, vector<1x256xf32>
    %353 = vector.broadcast %141 : f32 to vector<1x256xf32>
    %354 = arith.mulf %353, %352 : vector<1x256xf32>
    %355 = arith.addf %351, %354 : vector<1x256xf32>
    %c-1_i32 = arith.constant -1 : i32
    %356 = vector.broadcast %c-1_i32 : i32 to vector<1x256xi32>
    %357 = arith.addi %163, %356 : vector<1x256xi32>
    %c0_i32_108 = arith.constant 0 : i32
    %358 = vector.broadcast %c0_i32_108 : i32 to vector<1x256xi32>
    %359 = arith.cmpi sge, %357, %358 : vector<1x256xi32>
    %c16_i32_109 = arith.constant 16 : i32
    %360 = vector.broadcast %c16_i32_109 : i32 to vector<1x256xi32>
    %361 = arith.cmpi slt, %357, %360 : vector<1x256xi32>
    %362 = arith.andi %359, %361 : vector<1x256xi1>
    %cst_110 = arith.constant 0.000000e+00 : f32
    %363 = vector.broadcast %cst_110 : f32 to vector<1x256xf32>
    %364 = arith.select %362, %355, %363 : vector<1x256xi1>, vector<1x256xf32>
    %365 = arith.addf %298, %364 : vector<1x256xf32>
    %cst_111 = arith.constant 0.000000e+00 : f32
    %366 = vector.broadcast %cst_111 : f32 to vector<1x256xf32>
    %c0_112 = arith.constant 0 : index
    %c80_113 = arith.constant 80 : index
    %367 = vector.load %arg7[%c0_112, %c80_113] : memref<2x512xf32, #tpu.memory_space<vmem>>, vector<1x256xf32>
    %368 = vector.broadcast %51 : f32 to vector<1x256xf32>
    %369 = arith.mulf %368, %367 : vector<1x256xf32>
    %370 = arith.addf %366, %369 : vector<1x256xf32>
    %c0_114 = arith.constant 0 : index
    %c96_115 = arith.constant 96 : index
    %371 = vector.load %arg7[%c0_114, %c96_115] : memref<2x512xf32, #tpu.memory_space<vmem>>, vector<1x256xf32>
    %372 = vector.broadcast %58 : f32 to vector<1x256xf32>
    %373 = arith.mulf %372, %371 : vector<1x256xf32>
    %374 = arith.addf %370, %373 : vector<1x256xf32>
    %c0_116 = arith.constant 0 : index
    %c112 = arith.constant 112 : index
    %375 = vector.load %arg7[%c0_116, %c112] : memref<2x512xf32, #tpu.memory_space<vmem>>, vector<1x256xf32>
    %376 = vector.broadcast %65 : f32 to vector<1x256xf32>
    %377 = arith.mulf %376, %375 : vector<1x256xf32>
    %378 = arith.addf %374, %377 : vector<1x256xf32>
    %c0_117 = arith.constant 0 : index
    %c128_118 = arith.constant 128 : index
    %379 = vector.load %arg7[%c0_117, %c128_118] : memref<2x512xf32, #tpu.memory_space<vmem>>, vector<1x256xf32>
    %380 = vector.broadcast %72 : f32 to vector<1x256xf32>
    %381 = arith.mulf %380, %379 : vector<1x256xf32>
    %382 = arith.addf %378, %381 : vector<1x256xf32>
    %c0_119 = arith.constant 0 : index
    %c144 = arith.constant 144 : index
    %383 = vector.load %arg7[%c0_119, %c144] : memref<2x512xf32, #tpu.memory_space<vmem>>, vector<1x256xf32>
    %384 = vector.broadcast %79 : f32 to vector<1x256xf32>
    %385 = arith.mulf %384, %383 : vector<1x256xf32>
    %386 = arith.addf %382, %385 : vector<1x256xf32>
    %c0_120 = arith.constant 0 : index
    %c160 = arith.constant 160 : index
    %387 = vector.load %arg7[%c0_120, %c160] : memref<2x512xf32, #tpu.memory_space<vmem>>, vector<1x256xf32>
    %388 = vector.broadcast %86 : f32 to vector<1x256xf32>
    %389 = arith.mulf %388, %387 : vector<1x256xf32>
    %390 = arith.addf %386, %389 : vector<1x256xf32>
    %c0_121 = arith.constant 0 : index
    %c176 = arith.constant 176 : index
    %391 = vector.load %arg7[%c0_121, %c176] : memref<2x512xf32, #tpu.memory_space<vmem>>, vector<1x256xf32>
    %392 = vector.broadcast %93 : f32 to vector<1x256xf32>
    %393 = arith.mulf %392, %391 : vector<1x256xf32>
    %394 = arith.addf %390, %393 : vector<1x256xf32>
    %c1_122 = arith.constant 1 : index
    %c80_123 = arith.constant 80 : index
    %395 = vector.load %arg7[%c1_122, %c80_123] : memref<2x512xf32, #tpu.memory_space<vmem>>, vector<1x256xf32>
    %396 = vector.broadcast %100 : f32 to vector<1x256xf32>
    %397 = arith.mulf %396, %395 : vector<1x256xf32>
    %398 = arith.addf %394, %397 : vector<1x256xf32>
    %c1_124 = arith.constant 1 : index
    %c96_125 = arith.constant 96 : index
    %399 = vector.load %arg7[%c1_124, %c96_125] : memref<2x512xf32, #tpu.memory_space<vmem>>, vector<1x256xf32>
    %400 = vector.broadcast %107 : f32 to vector<1x256xf32>
    %401 = arith.mulf %400, %399 : vector<1x256xf32>
    %402 = arith.addf %398, %401 : vector<1x256xf32>
    %c1_126 = arith.constant 1 : index
    %c112_127 = arith.constant 112 : index
    %403 = vector.load %arg7[%c1_126, %c112_127] : memref<2x512xf32, #tpu.memory_space<vmem>>, vector<1x256xf32>
    %404 = vector.broadcast %114 : f32 to vector<1x256xf32>
    %405 = arith.mulf %404, %403 : vector<1x256xf32>
    %406 = arith.addf %402, %405 : vector<1x256xf32>
    %c1_128 = arith.constant 1 : index
    %c128_129 = arith.constant 128 : index
    %407 = vector.load %arg7[%c1_128, %c128_129] : memref<2x512xf32, #tpu.memory_space<vmem>>, vector<1x256xf32>
    %408 = vector.broadcast %121 : f32 to vector<1x256xf32>
    %409 = arith.mulf %408, %407 : vector<1x256xf32>
    %410 = arith.addf %406, %409 : vector<1x256xf32>
    %c1_130 = arith.constant 1 : index
    %c144_131 = arith.constant 144 : index
    %411 = vector.load %arg7[%c1_130, %c144_131] : memref<2x512xf32, #tpu.memory_space<vmem>>, vector<1x256xf32>
    %412 = vector.broadcast %128 : f32 to vector<1x256xf32>
    %413 = arith.mulf %412, %411 : vector<1x256xf32>
    %414 = arith.addf %410, %413 : vector<1x256xf32>
    %c1_132 = arith.constant 1 : index
    %c160_133 = arith.constant 160 : index
    %415 = vector.load %arg7[%c1_132, %c160_133] : memref<2x512xf32, #tpu.memory_space<vmem>>, vector<1x256xf32>
    %416 = vector.broadcast %135 : f32 to vector<1x256xf32>
    %417 = arith.mulf %416, %415 : vector<1x256xf32>
    %418 = arith.addf %414, %417 : vector<1x256xf32>
    %c1_134 = arith.constant 1 : index
    %c176_135 = arith.constant 176 : index
    %419 = vector.load %arg7[%c1_134, %c176_135] : memref<2x512xf32, #tpu.memory_space<vmem>>, vector<1x256xf32>
    %420 = vector.broadcast %142 : f32 to vector<1x256xf32>
    %421 = arith.mulf %420, %419 : vector<1x256xf32>
    %422 = arith.addf %418, %421 : vector<1x256xf32>
    %c0_i32_136 = arith.constant 0 : i32
    %423 = vector.broadcast %c0_i32_136 : i32 to vector<1x256xi32>
    %424 = arith.addi %163, %423 : vector<1x256xi32>
    %c0_i32_137 = arith.constant 0 : i32
    %425 = vector.broadcast %c0_i32_137 : i32 to vector<1x256xi32>
    %426 = arith.cmpi sge, %424, %425 : vector<1x256xi32>
    %c16_i32_138 = arith.constant 16 : i32
    %427 = vector.broadcast %c16_i32_138 : i32 to vector<1x256xi32>
    %428 = arith.cmpi slt, %424, %427 : vector<1x256xi32>
    %429 = arith.andi %426, %428 : vector<1x256xi1>
    %cst_139 = arith.constant 0.000000e+00 : f32
    %430 = vector.broadcast %cst_139 : f32 to vector<1x256xf32>
    %431 = arith.select %429, %422, %430 : vector<1x256xi1>, vector<1x256xf32>
    %432 = arith.addf %365, %431 : vector<1x256xf32>
    %cst_140 = arith.constant 0.000000e+00 : f32
    %433 = vector.broadcast %cst_140 : f32 to vector<1x256xf32>
    %c0_141 = arith.constant 0 : index
    %c81_142 = arith.constant 81 : index
    %434 = vector.load %arg7[%c0_141, %c81_142] : memref<2x512xf32, #tpu.memory_space<vmem>>, vector<1x256xf32>
    %435 = vector.broadcast %52 : f32 to vector<1x256xf32>
    %436 = arith.mulf %435, %434 : vector<1x256xf32>
    %437 = arith.addf %433, %436 : vector<1x256xf32>
    %c0_143 = arith.constant 0 : index
    %c97_144 = arith.constant 97 : index
    %438 = vector.load %arg7[%c0_143, %c97_144] : memref<2x512xf32, #tpu.memory_space<vmem>>, vector<1x256xf32>
    %439 = vector.broadcast %59 : f32 to vector<1x256xf32>
    %440 = arith.mulf %439, %438 : vector<1x256xf32>
    %441 = arith.addf %437, %440 : vector<1x256xf32>
    %c0_145 = arith.constant 0 : index
    %c113 = arith.constant 113 : index
    %442 = vector.load %arg7[%c0_145, %c113] : memref<2x512xf32, #tpu.memory_space<vmem>>, vector<1x256xf32>
    %443 = vector.broadcast %66 : f32 to vector<1x256xf32>
    %444 = arith.mulf %443, %442 : vector<1x256xf32>
    %445 = arith.addf %441, %444 : vector<1x256xf32>
    %c0_146 = arith.constant 0 : index
    %c129 = arith.constant 129 : index
    %446 = vector.load %arg7[%c0_146, %c129] : memref<2x512xf32, #tpu.memory_space<vmem>>, vector<1x256xf32>
    %447 = vector.broadcast %73 : f32 to vector<1x256xf32>
    %448 = arith.mulf %447, %446 : vector<1x256xf32>
    %449 = arith.addf %445, %448 : vector<1x256xf32>
    %c0_147 = arith.constant 0 : index
    %c145 = arith.constant 145 : index
    %450 = vector.load %arg7[%c0_147, %c145] : memref<2x512xf32, #tpu.memory_space<vmem>>, vector<1x256xf32>
    %451 = vector.broadcast %80 : f32 to vector<1x256xf32>
    %452 = arith.mulf %451, %450 : vector<1x256xf32>
    %453 = arith.addf %449, %452 : vector<1x256xf32>
    %c0_148 = arith.constant 0 : index
    %c161 = arith.constant 161 : index
    %454 = vector.load %arg7[%c0_148, %c161] : memref<2x512xf32, #tpu.memory_space<vmem>>, vector<1x256xf32>
    %455 = vector.broadcast %87 : f32 to vector<1x256xf32>
    %456 = arith.mulf %455, %454 : vector<1x256xf32>
    %457 = arith.addf %453, %456 : vector<1x256xf32>
    %c0_149 = arith.constant 0 : index
    %c177 = arith.constant 177 : index
    %458 = vector.load %arg7[%c0_149, %c177] : memref<2x512xf32, #tpu.memory_space<vmem>>, vector<1x256xf32>
    %459 = vector.broadcast %94 : f32 to vector<1x256xf32>
    %460 = arith.mulf %459, %458 : vector<1x256xf32>
    %461 = arith.addf %457, %460 : vector<1x256xf32>
    %c1_150 = arith.constant 1 : index
    %c81_151 = arith.constant 81 : index
    %462 = vector.load %arg7[%c1_150, %c81_151] : memref<2x512xf32, #tpu.memory_space<vmem>>, vector<1x256xf32>
    %463 = vector.broadcast %101 : f32 to vector<1x256xf32>
    %464 = arith.mulf %463, %462 : vector<1x256xf32>
    %465 = arith.addf %461, %464 : vector<1x256xf32>
    %c1_152 = arith.constant 1 : index
    %c97_153 = arith.constant 97 : index
    %466 = vector.load %arg7[%c1_152, %c97_153] : memref<2x512xf32, #tpu.memory_space<vmem>>, vector<1x256xf32>
    %467 = vector.broadcast %108 : f32 to vector<1x256xf32>
    %468 = arith.mulf %467, %466 : vector<1x256xf32>
    %469 = arith.addf %465, %468 : vector<1x256xf32>
    %c1_154 = arith.constant 1 : index
    %c113_155 = arith.constant 113 : index
    %470 = vector.load %arg7[%c1_154, %c113_155] : memref<2x512xf32, #tpu.memory_space<vmem>>, vector<1x256xf32>
    %471 = vector.broadcast %115 : f32 to vector<1x256xf32>
    %472 = arith.mulf %471, %470 : vector<1x256xf32>
    %473 = arith.addf %469, %472 : vector<1x256xf32>
    %c1_156 = arith.constant 1 : index
    %c129_157 = arith.constant 129 : index
    %474 = vector.load %arg7[%c1_156, %c129_157] : memref<2x512xf32, #tpu.memory_space<vmem>>, vector<1x256xf32>
    %475 = vector.broadcast %122 : f32 to vector<1x256xf32>
    %476 = arith.mulf %475, %474 : vector<1x256xf32>
    %477 = arith.addf %473, %476 : vector<1x256xf32>
    %c1_158 = arith.constant 1 : index
    %c145_159 = arith.constant 145 : index
    %478 = vector.load %arg7[%c1_158, %c145_159] : memref<2x512xf32, #tpu.memory_space<vmem>>, vector<1x256xf32>
    %479 = vector.broadcast %129 : f32 to vector<1x256xf32>
    %480 = arith.mulf %479, %478 : vector<1x256xf32>
    %481 = arith.addf %477, %480 : vector<1x256xf32>
    %c1_160 = arith.constant 1 : index
    %c161_161 = arith.constant 161 : index
    %482 = vector.load %arg7[%c1_160, %c161_161] : memref<2x512xf32, #tpu.memory_space<vmem>>, vector<1x256xf32>
    %483 = vector.broadcast %136 : f32 to vector<1x256xf32>
    %484 = arith.mulf %483, %482 : vector<1x256xf32>
    %485 = arith.addf %481, %484 : vector<1x256xf32>
    %c1_162 = arith.constant 1 : index
    %c177_163 = arith.constant 177 : index
    %486 = vector.load %arg7[%c1_162, %c177_163] : memref<2x512xf32, #tpu.memory_space<vmem>>, vector<1x256xf32>
    %487 = vector.broadcast %143 : f32 to vector<1x256xf32>
    %488 = arith.mulf %487, %486 : vector<1x256xf32>
    %489 = arith.addf %485, %488 : vector<1x256xf32>
    %c1_i32_164 = arith.constant 1 : i32
    %490 = vector.broadcast %c1_i32_164 : i32 to vector<1x256xi32>
    %491 = arith.addi %163, %490 : vector<1x256xi32>
    %c0_i32_165 = arith.constant 0 : i32
    %492 = vector.broadcast %c0_i32_165 : i32 to vector<1x256xi32>
    %493 = arith.cmpi sge, %491, %492 : vector<1x256xi32>
    %c16_i32_166 = arith.constant 16 : i32
    %494 = vector.broadcast %c16_i32_166 : i32 to vector<1x256xi32>
    %495 = arith.cmpi slt, %491, %494 : vector<1x256xi32>
    %496 = arith.andi %493, %495 : vector<1x256xi1>
    %cst_167 = arith.constant 0.000000e+00 : f32
    %497 = vector.broadcast %cst_167 : f32 to vector<1x256xf32>
    %498 = arith.select %496, %489, %497 : vector<1x256xi1>, vector<1x256xf32>
    %499 = arith.addf %432, %498 : vector<1x256xf32>
    %cst_168 = arith.constant 0.000000e+00 : f32
    %500 = vector.broadcast %cst_168 : f32 to vector<1x256xf32>
    %c0_169 = arith.constant 0 : index
    %c82_170 = arith.constant 82 : index
    %501 = vector.load %arg7[%c0_169, %c82_170] : memref<2x512xf32, #tpu.memory_space<vmem>>, vector<1x256xf32>
    %502 = vector.broadcast %53 : f32 to vector<1x256xf32>
    %503 = arith.mulf %502, %501 : vector<1x256xf32>
    %504 = arith.addf %500, %503 : vector<1x256xf32>
    %c0_171 = arith.constant 0 : index
    %c98 = arith.constant 98 : index
    %505 = vector.load %arg7[%c0_171, %c98] : memref<2x512xf32, #tpu.memory_space<vmem>>, vector<1x256xf32>
    %506 = vector.broadcast %60 : f32 to vector<1x256xf32>
    %507 = arith.mulf %506, %505 : vector<1x256xf32>
    %508 = arith.addf %504, %507 : vector<1x256xf32>
    %c0_172 = arith.constant 0 : index
    %c114 = arith.constant 114 : index
    %509 = vector.load %arg7[%c0_172, %c114] : memref<2x512xf32, #tpu.memory_space<vmem>>, vector<1x256xf32>
    %510 = vector.broadcast %67 : f32 to vector<1x256xf32>
    %511 = arith.mulf %510, %509 : vector<1x256xf32>
    %512 = arith.addf %508, %511 : vector<1x256xf32>
    %c0_173 = arith.constant 0 : index
    %c130 = arith.constant 130 : index
    %513 = vector.load %arg7[%c0_173, %c130] : memref<2x512xf32, #tpu.memory_space<vmem>>, vector<1x256xf32>
    %514 = vector.broadcast %74 : f32 to vector<1x256xf32>
    %515 = arith.mulf %514, %513 : vector<1x256xf32>
    %516 = arith.addf %512, %515 : vector<1x256xf32>
    %c0_174 = arith.constant 0 : index
    %c146 = arith.constant 146 : index
    %517 = vector.load %arg7[%c0_174, %c146] : memref<2x512xf32, #tpu.memory_space<vmem>>, vector<1x256xf32>
    %518 = vector.broadcast %81 : f32 to vector<1x256xf32>
    %519 = arith.mulf %518, %517 : vector<1x256xf32>
    %520 = arith.addf %516, %519 : vector<1x256xf32>
    %c0_175 = arith.constant 0 : index
    %c162 = arith.constant 162 : index
    %521 = vector.load %arg7[%c0_175, %c162] : memref<2x512xf32, #tpu.memory_space<vmem>>, vector<1x256xf32>
    %522 = vector.broadcast %88 : f32 to vector<1x256xf32>
    %523 = arith.mulf %522, %521 : vector<1x256xf32>
    %524 = arith.addf %520, %523 : vector<1x256xf32>
    %c0_176 = arith.constant 0 : index
    %c178 = arith.constant 178 : index
    %525 = vector.load %arg7[%c0_176, %c178] : memref<2x512xf32, #tpu.memory_space<vmem>>, vector<1x256xf32>
    %526 = vector.broadcast %95 : f32 to vector<1x256xf32>
    %527 = arith.mulf %526, %525 : vector<1x256xf32>
    %528 = arith.addf %524, %527 : vector<1x256xf32>
    %c1_177 = arith.constant 1 : index
    %c82_178 = arith.constant 82 : index
    %529 = vector.load %arg7[%c1_177, %c82_178] : memref<2x512xf32, #tpu.memory_space<vmem>>, vector<1x256xf32>
    %530 = vector.broadcast %102 : f32 to vector<1x256xf32>
    %531 = arith.mulf %530, %529 : vector<1x256xf32>
    %532 = arith.addf %528, %531 : vector<1x256xf32>
    %c1_179 = arith.constant 1 : index
    %c98_180 = arith.constant 98 : index
    %533 = vector.load %arg7[%c1_179, %c98_180] : memref<2x512xf32, #tpu.memory_space<vmem>>, vector<1x256xf32>
    %534 = vector.broadcast %109 : f32 to vector<1x256xf32>
    %535 = arith.mulf %534, %533 : vector<1x256xf32>
    %536 = arith.addf %532, %535 : vector<1x256xf32>
    %c1_181 = arith.constant 1 : index
    %c114_182 = arith.constant 114 : index
    %537 = vector.load %arg7[%c1_181, %c114_182] : memref<2x512xf32, #tpu.memory_space<vmem>>, vector<1x256xf32>
    %538 = vector.broadcast %116 : f32 to vector<1x256xf32>
    %539 = arith.mulf %538, %537 : vector<1x256xf32>
    %540 = arith.addf %536, %539 : vector<1x256xf32>
    %c1_183 = arith.constant 1 : index
    %c130_184 = arith.constant 130 : index
    %541 = vector.load %arg7[%c1_183, %c130_184] : memref<2x512xf32, #tpu.memory_space<vmem>>, vector<1x256xf32>
    %542 = vector.broadcast %123 : f32 to vector<1x256xf32>
    %543 = arith.mulf %542, %541 : vector<1x256xf32>
    %544 = arith.addf %540, %543 : vector<1x256xf32>
    %c1_185 = arith.constant 1 : index
    %c146_186 = arith.constant 146 : index
    %545 = vector.load %arg7[%c1_185, %c146_186] : memref<2x512xf32, #tpu.memory_space<vmem>>, vector<1x256xf32>
    %546 = vector.broadcast %130 : f32 to vector<1x256xf32>
    %547 = arith.mulf %546, %545 : vector<1x256xf32>
    %548 = arith.addf %544, %547 : vector<1x256xf32>
    %c1_187 = arith.constant 1 : index
    %c162_188 = arith.constant 162 : index
    %549 = vector.load %arg7[%c1_187, %c162_188] : memref<2x512xf32, #tpu.memory_space<vmem>>, vector<1x256xf32>
    %550 = vector.broadcast %137 : f32 to vector<1x256xf32>
    %551 = arith.mulf %550, %549 : vector<1x256xf32>
    %552 = arith.addf %548, %551 : vector<1x256xf32>
    %c1_189 = arith.constant 1 : index
    %c178_190 = arith.constant 178 : index
    %553 = vector.load %arg7[%c1_189, %c178_190] : memref<2x512xf32, #tpu.memory_space<vmem>>, vector<1x256xf32>
    %554 = vector.broadcast %144 : f32 to vector<1x256xf32>
    %555 = arith.mulf %554, %553 : vector<1x256xf32>
    %556 = arith.addf %552, %555 : vector<1x256xf32>
    %c2_i32 = arith.constant 2 : i32
    %557 = vector.broadcast %c2_i32 : i32 to vector<1x256xi32>
    %558 = arith.addi %163, %557 : vector<1x256xi32>
    %c0_i32_191 = arith.constant 0 : i32
    %559 = vector.broadcast %c0_i32_191 : i32 to vector<1x256xi32>
    %560 = arith.cmpi sge, %558, %559 : vector<1x256xi32>
    %c16_i32_192 = arith.constant 16 : i32
    %561 = vector.broadcast %c16_i32_192 : i32 to vector<1x256xi32>
    %562 = arith.cmpi slt, %558, %561 : vector<1x256xi32>
    %563 = arith.andi %560, %562 : vector<1x256xi1>
    %cst_193 = arith.constant 0.000000e+00 : f32
    %564 = vector.broadcast %cst_193 : f32 to vector<1x256xf32>
    %565 = arith.select %563, %556, %564 : vector<1x256xi1>, vector<1x256xf32>
    %566 = arith.addf %499, %565 : vector<1x256xf32>
    %cst_194 = arith.constant 0.000000e+00 : f32
    %567 = vector.broadcast %cst_194 : f32 to vector<1x256xf32>
    %c0_195 = arith.constant 0 : index
    %c83_196 = arith.constant 83 : index
    %568 = vector.load %arg7[%c0_195, %c83_196] : memref<2x512xf32, #tpu.memory_space<vmem>>, vector<1x256xf32>
    %569 = vector.broadcast %54 : f32 to vector<1x256xf32>
    %570 = arith.mulf %569, %568 : vector<1x256xf32>
    %571 = arith.addf %567, %570 : vector<1x256xf32>
    %c0_197 = arith.constant 0 : index
    %c99 = arith.constant 99 : index
    %572 = vector.load %arg7[%c0_197, %c99] : memref<2x512xf32, #tpu.memory_space<vmem>>, vector<1x256xf32>
    %573 = vector.broadcast %61 : f32 to vector<1x256xf32>
    %574 = arith.mulf %573, %572 : vector<1x256xf32>
    %575 = arith.addf %571, %574 : vector<1x256xf32>
    %c0_198 = arith.constant 0 : index
    %c115 = arith.constant 115 : index
    %576 = vector.load %arg7[%c0_198, %c115] : memref<2x512xf32, #tpu.memory_space<vmem>>, vector<1x256xf32>
    %577 = vector.broadcast %68 : f32 to vector<1x256xf32>
    %578 = arith.mulf %577, %576 : vector<1x256xf32>
    %579 = arith.addf %575, %578 : vector<1x256xf32>
    %c0_199 = arith.constant 0 : index
    %c131 = arith.constant 131 : index
    %580 = vector.load %arg7[%c0_199, %c131] : memref<2x512xf32, #tpu.memory_space<vmem>>, vector<1x256xf32>
    %581 = vector.broadcast %75 : f32 to vector<1x256xf32>
    %582 = arith.mulf %581, %580 : vector<1x256xf32>
    %583 = arith.addf %579, %582 : vector<1x256xf32>
    %c0_200 = arith.constant 0 : index
    %c147 = arith.constant 147 : index
    %584 = vector.load %arg7[%c0_200, %c147] : memref<2x512xf32, #tpu.memory_space<vmem>>, vector<1x256xf32>
    %585 = vector.broadcast %82 : f32 to vector<1x256xf32>
    %586 = arith.mulf %585, %584 : vector<1x256xf32>
    %587 = arith.addf %583, %586 : vector<1x256xf32>
    %c0_201 = arith.constant 0 : index
    %c163 = arith.constant 163 : index
    %588 = vector.load %arg7[%c0_201, %c163] : memref<2x512xf32, #tpu.memory_space<vmem>>, vector<1x256xf32>
    %589 = vector.broadcast %89 : f32 to vector<1x256xf32>
    %590 = arith.mulf %589, %588 : vector<1x256xf32>
    %591 = arith.addf %587, %590 : vector<1x256xf32>
    %c0_202 = arith.constant 0 : index
    %c179 = arith.constant 179 : index
    %592 = vector.load %arg7[%c0_202, %c179] : memref<2x512xf32, #tpu.memory_space<vmem>>, vector<1x256xf32>
    %593 = vector.broadcast %96 : f32 to vector<1x256xf32>
    %594 = arith.mulf %593, %592 : vector<1x256xf32>
    %595 = arith.addf %591, %594 : vector<1x256xf32>
    %c1_203 = arith.constant 1 : index
    %c83_204 = arith.constant 83 : index
    %596 = vector.load %arg7[%c1_203, %c83_204] : memref<2x512xf32, #tpu.memory_space<vmem>>, vector<1x256xf32>
    %597 = vector.broadcast %103 : f32 to vector<1x256xf32>
    %598 = arith.mulf %597, %596 : vector<1x256xf32>
    %599 = arith.addf %595, %598 : vector<1x256xf32>
    %c1_205 = arith.constant 1 : index
    %c99_206 = arith.constant 99 : index
    %600 = vector.load %arg7[%c1_205, %c99_206] : memref<2x512xf32, #tpu.memory_space<vmem>>, vector<1x256xf32>
    %601 = vector.broadcast %110 : f32 to vector<1x256xf32>
    %602 = arith.mulf %601, %600 : vector<1x256xf32>
    %603 = arith.addf %599, %602 : vector<1x256xf32>
    %c1_207 = arith.constant 1 : index
    %c115_208 = arith.constant 115 : index
    %604 = vector.load %arg7[%c1_207, %c115_208] : memref<2x512xf32, #tpu.memory_space<vmem>>, vector<1x256xf32>
    %605 = vector.broadcast %117 : f32 to vector<1x256xf32>
    %606 = arith.mulf %605, %604 : vector<1x256xf32>
    %607 = arith.addf %603, %606 : vector<1x256xf32>
    %c1_209 = arith.constant 1 : index
    %c131_210 = arith.constant 131 : index
    %608 = vector.load %arg7[%c1_209, %c131_210] : memref<2x512xf32, #tpu.memory_space<vmem>>, vector<1x256xf32>
    %609 = vector.broadcast %124 : f32 to vector<1x256xf32>
    %610 = arith.mulf %609, %608 : vector<1x256xf32>
    %611 = arith.addf %607, %610 : vector<1x256xf32>
    %c1_211 = arith.constant 1 : index
    %c147_212 = arith.constant 147 : index
    %612 = vector.load %arg7[%c1_211, %c147_212] : memref<2x512xf32, #tpu.memory_space<vmem>>, vector<1x256xf32>
    %613 = vector.broadcast %131 : f32 to vector<1x256xf32>
    %614 = arith.mulf %613, %612 : vector<1x256xf32>
    %615 = arith.addf %611, %614 : vector<1x256xf32>
    %c1_213 = arith.constant 1 : index
    %c163_214 = arith.constant 163 : index
    %616 = vector.load %arg7[%c1_213, %c163_214] : memref<2x512xf32, #tpu.memory_space<vmem>>, vector<1x256xf32>
    %617 = vector.broadcast %138 : f32 to vector<1x256xf32>
    %618 = arith.mulf %617, %616 : vector<1x256xf32>
    %619 = arith.addf %615, %618 : vector<1x256xf32>
    %c1_215 = arith.constant 1 : index
    %c179_216 = arith.constant 179 : index
    %620 = vector.load %arg7[%c1_215, %c179_216] : memref<2x512xf32, #tpu.memory_space<vmem>>, vector<1x256xf32>
    %621 = vector.broadcast %145 : f32 to vector<1x256xf32>
    %622 = arith.mulf %621, %620 : vector<1x256xf32>
    %623 = arith.addf %619, %622 : vector<1x256xf32>
    %c3_i32 = arith.constant 3 : i32
    %624 = vector.broadcast %c3_i32 : i32 to vector<1x256xi32>
    %625 = arith.addi %163, %624 : vector<1x256xi32>
    %c0_i32_217 = arith.constant 0 : i32
    %626 = vector.broadcast %c0_i32_217 : i32 to vector<1x256xi32>
    %627 = arith.cmpi sge, %625, %626 : vector<1x256xi32>
    %c16_i32_218 = arith.constant 16 : i32
    %628 = vector.broadcast %c16_i32_218 : i32 to vector<1x256xi32>
    %629 = arith.cmpi slt, %625, %628 : vector<1x256xi32>
    %630 = arith.andi %627, %629 : vector<1x256xi1>
    %cst_219 = arith.constant 0.000000e+00 : f32
    %631 = vector.broadcast %cst_219 : f32 to vector<1x256xf32>
    %632 = arith.select %630, %623, %631 : vector<1x256xi1>, vector<1x256xf32>
    %633 = arith.addf %566, %632 : vector<1x256xf32>
    %634 = vector.broadcast %146 : f32 to vector<1x256xf32>
    %635 = arith.addf %633, %634 : vector<1x256xf32>
    %636 = arith.negf %635 : vector<1x256xf32>
    %637 = math.exp %636 : vector<1x256xf32>
    %cst_220 = arith.constant 1.000000e+00 : f32
    %638 = vector.broadcast %cst_220 : f32 to vector<1x256xf32>
    %639 = arith.addf %638, %637 : vector<1x256xf32>
    %640 = arith.divf %638, %639 : vector<1x256xf32>
    %641 = vector.broadcast %640 : vector<1x256xf32> to vector<32x256xf32>
    %642 = arith.mulf %37, %641 : vector<32x256xf32>
    %643 = arith.addf %642, %1 : vector<32x256xf32>
    %c0_221 = arith.constant 0 : index
    %c0_222 = arith.constant 0 : index
    %c0_223 = arith.constant 0 : index
    %644 = vector.load %arg6[%c0_221, %c0_222, %c0_223] : memref<1x32x256xf32, #tpu.memory_space<vmem>>, vector<1x32x256xf32>
    %645 = vector.shape_cast %644 : vector<1x32x256xf32> to vector<32x256xf32>
    %646 = vector.shape_cast %643 : vector<32x256xf32> to vector<1x32x256xf32>
    tpu.vector_store %arg6[%c0_221, %c0_222, %c0_223], %646 {strides = array<i32>} : memref<1x32x256xf32, #tpu.memory_space<vmem>>, vector<1x32x256xf32>,
    return
  }
  func.func @transform_0(%arg0: i32) -> (i32, i32, i32) {
    %c0_i32 = arith.constant 0 : i32
    %c0_i32_0 = arith.constant 0 : i32
    %c0_i32_1 = arith.constant 0 : i32
    return %arg0, %c0_i32, %c0_i32_0 : i32, i32, i32
  }
  func.func @transform_1(%arg0: i32) -> (i32, i32) {
    %c0_i32 = arith.constant 0 : i32
    %c0_i32_0 = arith.constant 0 : i32
    %c0_i32_1 = arith.constant 0 : i32
    return %c0_i32, %c0_i32_0 : i32, i32
  }
  func.func @transform_2(%arg0: i32) -> (i32, i32) {
    %c0_i32 = arith.constant 0 : i32
    %c0_i32_0 = arith.constant 0 : i32
    %c0_i32_1 = arith.constant 0 : i32
    return %c0_i32, %c0_i32_0 : i32, i32
  }
  func.func @transform_3(%arg0: i32) -> i32 {
    %c0_i32 = arith.constant 0 : i32
    %c0_i32_0 = arith.constant 0 : i32
    return %c0_i32 : i32
  }
  func.func @transform_4(%arg0: i32) -> i32 {
    %c0_i32 = arith.constant 0 : i32
    %c0_i32_0 = arith.constant 0 : i32
    return %c0_i32 : i32
  }
  func.func @transform_5(%arg0: i32) -> (i32, i32, i32) {
    %c0_i32 = arith.constant 0 : i32
    %c0_i32_0 = arith.constant 0 : i32
    %c0_i32_1 = arith.constant 0 : i32
    return %arg0, %c0_i32, %c0_i32_0 : i32, i32, i32
  }
}

</mosaic_0001>

<bundles_post_ra>
// kernel: tpu_custom_call.1
= control target key start
LH: loop header
LB: loop body
LE: loop exit
PB: predicated region body
PF: predicated region fallthrough
CT: control target
= control target key end

     0   :  { %s3085_s0 = inlined_call_operand.hbm [shape: f32[2,32,256], index: 0, kind: input, shape index: {}]   ;;  %s3086_s1 = inlined_call_operand.vmem [shape: f32[32,2], index: 1, kind: input, shape index: {}]   ;;  %s3087_s2 = inlined_call_operand.vmem [shape: f32[32,2], index: 2, kind: input, shape index: {}]   ;;  %s3088_s3 = inlined_call_operand.vmem [shape: f32[98], index: 3, kind: input, shape index: {}]   ;;  %s3089_s4 = inlined_call_operand.<no memory space> [shape: f32[1], index: 4, kind: input, shape index: {}]   ;;  %s3090_s5 = inlined_call_operand.hbm [shape: f32[2,32,256], index: 5, kind: output, shape index: {}]  }
   0x1   :  { %10 = sst [smem:[#allocation3]] %s3089_s4 }
   0x2   :  { %11 = vsyncpa [#allocation5], 0 }
   0x3   :  { %13 = vsyncpa [#allocation5 + $0x1], 0 }
   0x4   :  { %14 = vsyncpa [#allocation7], 0 }
   0x5   :  { %15 = vsyncpa [#allocation6], 0 }
   0x6   :  { %17 = vsyncpa [#allocation6 + $0x1], 0  ;;  %s2223_s20 = smov 0   ;;  %s2225_s21 = smov 0  }
   0x7   :  { %s2227_s22 = smov 0   ;;  %s2229_s23 = smov 0  }
   0x8 LB: > { %s2244_s4 = sadd.s32 4294967295, %s2167_s23   ;;  %s1824_s24 = sadd.s32 4294967294, %s2167_s23   ;;  %s2167_s23 = sphi %s2229_s23, %s3114_s23   ;;  %s2163_s22 = sphi %s2227_s22, %s3113_s22   ;;  %s2159_s21 = sphi %s2225_s21, %s3112_s21   ;;  %s2155_s20 = sphi %s2223_s20, %s3111_s20  }
   0x9   : > { %s2248_s25 = sadd.s32 1, %s2167_s23   ;;  %s30_s26 = sadd.s32 1, %s2163_s22 }
   0xa   : > { %s27_s27 = ssub.s32 %s2167_s23, %s2248_s25  ;;  %p37_p0 = scmp.ne.s32.totalorder %s2163_s22, %s2159_s21 }
   0xb   : > { %p28_p1 = scmp.eq.s32.totalorder %s27_s27, 0  ;;  %p38_p2 = scmp.eq.s32.totalorder %s2167_s23, 0 }
   0xc   : > { %p43_p3 = scmp.ne.s32.totalorder %s2159_s21, %s2155_s20  ;;  %p3092_p4 = scmp.eq.s32.totalorder %s2244_s4, 0 }
   0xd   : > { %s2260_s28 = scalar_select %p28_p1, %s2163_s22, %s30_s26  }
   0xe   : > { %p2262_p5 = por %p38_p2, %p37_p0  ;;  %p2268_p6 = por %p3092_p4, %p43_p3 }
   0xf   : > { %p151_p7 = scmp.eq.s32.totalorder %s2244_s4, 1  ;;  %p157_p8 = scmp.eq.s32.totalorder %s1824_s24, 1 }
  0x10   : > { %s3097_s30 = scalar_select %p2268_p6, 1, 0 }
  0x11   : > { %p1825_p9 = scmp.ge.s32.totalorder %s2167_s23, 1  ;;  %p164_p10 = scmp.lt.s32.totalorder %s2167_s23, 3 }
  0x12   : > { %p2275_p11 = por %p151_p7, %p37_p0  ;;  %p2279_p12 = por %p157_p8, %p43_p3 }
  0x13   : > { %p2283_p13 = pnand %p1825_p9, %p164_p10  ;;  %s183_s11 = sshll.u32 %s3088_s3, 4  ;;  %s184_s11 = int_to_ptr.vmem [resolvable:$true] %s183_s11 }
  0x14   : > { %s3098_s6 = scalar_select %p2275_p11, 1, 0 }
  0x15   : > { %s3099_s7 = scalar_select %p2279_p12, 1, 0 }
  0x16   : > { %p1953_p1 = pneg %p2283_p13  ;;  %p1966_p2 = scmp.lt.s32.totalorder %s2167_s23, 2 }
  0x17   : > { %s197_s13 = sand.u32 1, %s2163_s22   ;;  %s2052_s16 = scalar_lea.vmem %s184_s11, 16 }
  0x18   : > { %p2296_p7 = pnand %p1953_p1, %p3092_p4  ;;  %p2303_p3 = pnand %p1966_p2, %p2262_p5 }
  0x19   : > { %s1828_s15 = sshll.u32 %s197_s13, 6  ;;  %p2053_p8 = scmp.ne.s32.totalorder %s184_s11, %s2052_s16 }
  0x1a   : > { %p2054_p9 = pneg %p2296_p7  ;;  %p2060_p12 = scmp.lt.s32.totalorder %s184_s11, %s184_s11 }
  0x1b   : > { %p2061_p11 = scmp.lt.s32.totalorder %s2052_s16, %s2052_s16 }
  0x1c   : > { %p2055_p10 = pnand %p2054_p9, %p2053_p8 }
  0x1d   : > { %p2062_p1 = por %p2061_p11, %p2060_p12 }
  0x1e   : > { %p2056_p0 = pneg %p2055_p10 }
  0x20   : > { %p2063_p4 = pnand %p2062_p1, %p2056_p0 }
  0x22   : > { %2066 = shalt.err (!%p2063_p4)
}
  0x23   : > { %s2169_s17 = smov [#allocation8]   ;;  %s1943_s18 = sshll.u32 %s2167_s23, 10 }
  0x24   : > { %1956 = dma.vmem_to_smem (!%p2296_p7), %s184_s11, 16, %s2169_s17, [#allocation7]  }
  0x25   : > { %s201_s19 = scalar_lea.vmem [#allocation4], %s1828_s15  ;;  %s2315_s29 = scalar_lea.hbm %s3085_s0, %s1943_s18 }
  0x26   : > { %s208_s24 = sshll.u32 %s201_s19, 4  ;;  %s2319_s9 = scalar_lea.sflag [#allocation5], %s197_s13  ;;  %s2317_s24 = int_to_ptr.vmem [resolvable:$true] %s208_s24 }
  0x27   : > { %s2067_s10 = scalar_lea.hbm %s2315_s29, 1024  ;;  %p2069_p5 = pneg %p2303_p3 }
  0x28   : > { %p2068_p4 = scmp.ne.s32.totalorder %s2315_s29, %s2067_s10  ;;  %s2072_s15 = scalar_lea.hbm %s3085_s0, 2048 }
  0x29   : > { %p2073_p0 = scmp.lt.u32.totalorder %s2315_s29, %s3085_s0  ;;  %p2074_p2 = scmp.lt.u32.totalorder %s2072_s15, %s2067_s10 }
  0x2a   : > { %p2070_p11 = pnand %p2069_p5, %p2068_p4  ;;  %p2076_p8 = scmp.lt.u32.totalorder %s2067_s10, %s2315_s29 }
  0x2b   : > { %p2075_p7 = por %p2074_p2, %p2073_p0 }
  0x2c   : > { %p2071_p12 = pneg %p2070_p11 }
  0x2d   : > { %p2077_p9 = por %p2076_p8, %p2075_p7 }
  0x2f   : > { %p2078_p10 = pnand %p2077_p9, %p2071_p12 }
  0x31   : > { %2081 = shalt.err (!%p2078_p10)
}
  0x32   : > { %s2082_s13 = scalar_lea.vmem %s2317_s24, 1024  ;;  %s2170_s18 = smov [#allocation4]  }
  0x33   : > { %p2083_p1 = scmp.ne.s32.totalorder %s2317_s24, %s2082_s13  ;;  %s2087_s19 = sshll.u32 %s2170_s18, 4  ;;  %s2088_s19 = int_to_ptr.vmem [resolvable:$false] %s2087_s19 }
  0x34   : > { %s2089_s26 = scalar_lea.vmem %s2088_s19, 2048  ;;  %p2090_p6 = scmp.lt.s32.totalorder %s2317_s24, %s2088_s19 }
  0x35   : > { %p2085_p4 = pnand %p2083_p1, %p2069_p5  ;;  %p2091_p0 = scmp.lt.s32.totalorder %s2089_s26, %s2082_s13 }
  0x37   : > { %p2086_p11 = pneg %p2085_p4  ;;  %p2092_p2 = por %p2091_p0, %p2090_p6 }
  0x39   : > { %p2093_p7 = pnand %p2092_p2, %p2086_p11 }
  0x3b   : > { %2096 = shalt.err (!%p2093_p7)
}
  0x3c   : > { %s2171_s27 = smov 256   ;;  %s2172_s10 = smov 16  }
  0x3d   : > { %1960 = dma.hbm_to_vmem [thread:$0]  (!%p2303_p3), %s2315_s29, 1024, %s2317_s24, %s2319_s9, %s2171_s27, %s2171_s27, %s2172_s10  }
  0x3e   : > { %220 = sbr.rel (%p2283_p13) target bundleno = 941 (0x3ad), region = 40  ;;  %s2350_s11 = sand.u32 (!%p2283_p13), 1, %s2159_s21  }
  0x3f   : > { %s3094_s12 = sshll.u32 (!%p2283_p13), %s2350_s11, 6  ;;  %s223_s15 = scalar_lea.sflag (!%p2283_p13), [#allocation5], %s2350_s11 }
  0x40   : > { %s2356_s16 = scalar_lea.vmem (!%p2283_p13), [#allocation4], %s3094_s12  ;;  %p3103_p6 = scmp.ne.s32.totalorder (!%p2283_p13), %s3097_s30, 0 }
  0x45   : > { %2142 = dma.done.wait (%p3103_p6), %s223_s15, 1024  }
  0x46   : > { %2144 = vsyncadd (%p3103_p6), %s223_s15, 4294966272  ;;  %p3104_p3 = scmp.eq.s32.totalorder %s2244_s4, 0 }
  0x48   : > { %2146 = dma.done.wait (%p3104_p3), [#allocation7], 16   ;;  %p3105_p13 = pmov %p3104_p3 }
  0x4a   : > { %2148 = vsyncadd (%p3105_p13), [#allocation7], 4294967280 }
  0x4b   : > { %235 = sfence }
  0x4c   : > { %v2367_v0 = vld [vmem:[%s2356_s16] sm:$0xff]  ;;  %v2370_v1 = vld [vmem:[%s2356_s16 + $0x8] sm:$0xff]  ;;  %v2373_v2 = vld [vmem:[%s2356_s16 + $0x10] sm:$0xff]  ;;  %vm306_vm0 = vcmask 15360   ;;  %s1852_s14 = sld [smem:[#allocation8 + $0xe]]  ;;  %s1845_s24 = sld [smem:[#allocation8 + $0x7]] }
  0x4d   : > { %v278_v3 = vadd.f32 %v2370_v1, %v2367_v0  ;;  %v266_v4 = vmax.f32 %v2367_v0, %v2370_v1  ;;  %v2380_v5 = vld [vmem:[%s2356_s16 + $0x18] sm:$0xff]  ;;  %v2387_v8 = vld [vmem:[%s2356_s16 + $0x20] sm:$0xff]  ;;  %v2390_v9 = vld [vmem:[%s2356_s16 + $0x28] sm:$0xff]  ;;  %s1859_s29 = sld [smem:[#allocation8 + $0x15]]  ;;  %s1873_s9 = sld [smem:[#allocation8 + $0x23]]  ;;  %vm626_vm2 = vcmask 916480  }
  0x4e   : > { %v281_v6 = vadd.f32 %v2380_v5, %v2373_v2  ;;  %v269_v7 = vmax.f32 %v2373_v2, %v2380_v5  ;;  %v284_v10 = vadd.f32 %v2390_v9, %v2387_v8  ;;  %v272_v11 = vmax.f32 %v2387_v8, %v2390_v9  ;;  %v2397_v12 = vld [vmem:[%s2356_s16 + $0x30] sm:$0xff]  ;;  %v2400_v13 = vld [vmem:[%s2356_s16 + $0x38] sm:$0xff]  ;;  %v295_v19 = vld [vmem:[%s3086_s1 + $0x8] sm:$0xff]  ;;  %s1866_s17 = sld [smem:[#allocation8 + $0x1c]]  ;;  %s1853_s13 = sld [smem:[#allocation8 + $0xf]] }
  0x4f   : > { %279 = vadd.xlane.f32.xlu0 %v278_v3  ;;  %267 = vmax.xlane.f32.xlu1 %v266_v4  ;;  %v287_v14 = vadd.f32 %v2400_v13, %v2397_v12  ;;  %v275_v15 = vmax.f32 %v2397_v12, %v2400_v13  ;;  %v294_v20 = vld [vmem:[%s3086_s1] sm:$0xff]  ;;  %v296_v26 = vld [vmem:[%s3086_s1 + $0x10] sm:$0xff]  ;;  %v297_v36 = vld [vmem:[%s3086_s1 + $0x18] sm:$0xff]  ;;  %s1880_s18 = sld [smem:[#allocation8 + $0x2a]]  ;;  %s1860_s19 = sld [smem:[#allocation8 + $0x16]]  ;;  %vm636_vm3 = vcmask 785408  }
  0x50   : > { %v299_v4 = vld [vmem:[%s3087_s2 + $0x8] sm:$0xff]  ;;  %s2175_s26 = smov 96   ;;  %s3095_s27 = smov 112   ;;  %vm646_vm4 = vcmask 654336   ;;  %vm658_vm5 = vcmask 523264   ;;  %vm668_vm6 = vcmask 392192  }
  0x51   : > { %s1846_s10 = sld [smem:[#allocation8 + $0x8]]  ;;  %s1848_s15 = sld [smem:[#allocation8 + $0xa]]  ;;  %vm678_vm7 = vcmask 261120   ;;  %vm920_vm8 = vcmask 408576   ;;  %vm770_vm9 = vcmask 416768   ;;  %vm1070_vm12 = vcmask 400384  }
  0x52   : > { %s2177_s30 = smov 80   ;;  %s2178_s8 = smov 48  }
  0x53   : > { %282 = vadd.xlane.f32.xlu0 %v281_v6  ;;  %270 = vmax.xlane.f32.xlu1 %v269_v7  ;;  %v298_v6 = vld [vmem:[%s3087_s2] sm:$0xff]  ;;  %s2610_s12 = sld [smem:[#allocation8 + $0x5b]]  ;;  %p3108_p12 = scmp.ne.s32.totalorder %s3098_s6, 0 }
  0x57   : > { %285 = vadd.xlane.f32.xlu0 %v284_v10  ;;  %273 = vmax.xlane.f32.xlu1 %v272_v11  ;;  %v301_v10 = vld [vmem:[%s3087_s2 + $0x18] sm:$0xff] }
  0x5b   : > { %288 = vadd.xlane.f32.xlu0 %v287_v14  ;;  %276 = vmax.xlane.f32.xlu1 %v275_v15  ;;  %v300_v14 = vld [vmem:[%s3087_s2 + $0x10] sm:$0xff] }
  0xdc   : > { %v280_v16 = vpop.xlane.xlu0 %279  ;;  %v268_v17 = vpop.xlane.xlu1 %267 }
  0xdd   : > { %v290_v18 = vmul.f32 0.00390625, %v280_v16  ;;  %v302_v27 = vmul.f32 %v294_v20, %v268_v17 }
  0xdf   : > { %v337_v21 = vmul.f32 %v294_v20, %v290_v18  ;;  %v307_v37 = vsel %vm306_vm0, %v302_v27, 0.0 }
  0xe0   : > { %v283_v22 = vpop.xlane.xlu0 %282  ;;  %v271_v23 = vpop.xlane.xlu1 %270 }
  0xe1   : > { %v291_v24 = vmul.f32 0.00390625, %v283_v22  ;;  %v303_v25 = vmul.f32 %v295_v19, %v271_v23  ;;  %v341_v29 = vsel %vm306_vm0, %v337_v21, 0.0 }
  0xe3   : > { %v338_v28 = vmul.f32 %v295_v19, %v291_v24  ;;  %v308_v33 = vsel %vm306_vm0, %v303_v25, 0.0 }
  0xe4   : > { %v286_v30 = vpop.xlane.xlu0 %285  ;;  %v274_v31 = vpop.xlane.xlu1 %273  ;;  %v309_v41 = vadd.f32 %v308_v33, %v307_v37 }
  0xe5   : > { %v342_v32 = vsel %vm306_vm0, %v338_v28, 0.0  ;;  %v292_v34 = vmul.f32 0.00390625, %v286_v30  ;;  %v304_v35 = vmul.f32 %v296_v26, %v274_v31 }
  0xe6   : > { %v343_v40 = vadd.f32 %v342_v32, %v341_v29  ;;  %v2173_v32 = vmov 0.0  }
  0xe7   : > { %v339_v38 = vmul.f32 %v296_v26, %v292_v34  ;;  %v310_v39 = vsel %vm306_vm0, %v304_v35, 0.0  ;;  %445 = vst [vmem:[#allocation2] sm:$0xff] %v2173_v32 }
  0xe8   : > { %v289_v42 = vpop.xlane.xlu0 %288  ;;  %v277_v43 = vpop.xlane.xlu1 %276  ;;  %v311_v47 = vadd.f32 %v310_v39, %v309_v41 }
  0xe9   : > { %v344_v44 = vsel %vm306_vm0, %v339_v38, 0.0  ;;  %v293_v45 = vmul.f32 0.00390625, %v289_v42  ;;  %v305_v46 = vmul.f32 %v297_v36, %v277_v43 }
  0xea   : > { %v345_v50 = vadd.f32 %v344_v44, %v343_v40 }
  0xeb   : > { %v340_v48 = vmul.f32 %v297_v36, %v293_v45  ;;  %v312_v49 = vsel %vm306_vm0, %v305_v46, 0.0 }
  0xec   : > { %v313_v51 = vadd.f32 %v312_v49, %v311_v47 }
  0xed   : > { %v346_v52 = vsel %vm306_vm0, %v340_v48, 0.0 }
  0xee   : > { %v347_v53 = vadd.f32 %v346_v52, %v345_v50  ;;  %v314_v54 = vrot.slane %v313_v51, 4 }
  0xf0   : > { %v348_v55 = vrot.slane %v347_v53, 4  ;;  %v315_v56 = vadd.f32 %v314_v54, %v313_v51 }
  0xf2   : > { %v349_v57 = vadd.f32 %v348_v55, %v347_v53  ;;  %v316_v58 = vrot.slane %v315_v56, 2 }
  0xf4   : > { %v350_v59 = vrot.slane %v349_v57, 2  ;;  %v317_v60 = vadd.f32 %v316_v58, %v315_v56 }
  0xf6   : > { %v351_v61 = vadd.f32 %v350_v59, %v349_v57  ;;  %v318_v62 = vrot.slane %v317_v60, 1 }
  0xf8   : > { %v352_v63 = vrot.slane %v351_v61, 1  ;;  %v319_v3 = vadd.f32 %v318_v62, %v317_v60 }
  0xfa   : > { %v320_v7 = vmax.f32 %v319_v3, 0.0  ;;  %v353_v11 = vadd.f32 %v352_v63, %v351_v61 }
  0xfc   : > { %v322_v15 = vmul.f32 %v320_v7, %v299_v4  ;;  %v321_v16 = vmul.f32 %v320_v7, %v298_v6  ;;  %v324_v17 = vmul.f32 %v320_v7, %v301_v10  ;;  %v323_v20 = vmul.f32 %v320_v7, %v300_v14 }
  0xfd   : > { %v354_v21 = vmax.f32 %v353_v11, 0.0 }
  0xfe   : > { %v328_v18 = vsel %vm306_vm0, %v322_v15, 0.0  ;;  %v325_v19 = vsel %vm306_vm0, %v321_v16, 0.0  ;;  %v334_v22 = vsel %vm306_vm0, %v324_v17, 0.0  ;;  %v331_v23 = vsel %vm306_vm0, %v323_v20, 0.0 }
  0xff   : > { %329 = vadd.xlane.f32.xlu1 %v328_v18  ;;  %326 = vadd.xlane.f32.xlu0 %v325_v19  ;;  %v356_v24 = vmul.f32 %v354_v21, %v299_v4  ;;  %v355_v25 = vmul.f32 %v354_v21, %v298_v6  ;;  %v358_v28 = vmul.f32 %v354_v21, %v301_v10 }
 0x100   : > { %v357_v29 = vmul.f32 %v354_v21, %v300_v14  ;;  %v2174_v21 = vmov 1966171168  }
 0x101   : > { %v362_v26 = vsel %vm306_vm0, %v356_v24, 0.0  ;;  %v359_v27 = vsel %vm306_vm0, %v355_v25, 0.0  ;;  %v368_v30 = vsel %vm306_vm0, %v358_v28, 0.0 }
 0x102   : > { %v365_v31 = vsel %vm306_vm0, %v357_v29, 0.0 }
 0x103   : > { %335 = vadd.xlane.f32.xlu1 %v334_v22  ;;  %332 = vadd.xlane.f32.xlu0 %v331_v23  ;;  %v450_v22 = vunpack.c.l.s4 %v2174_v21  ;;  %v452_v23 = vlaneseq }
 0x105   : > { %v451_v32 = vunpack.c.0.s8 %v450_v22  ;;  %vm466_vm1 = vcmp.lt.s32.totalorder %v452_v23, 256 }
 0x107   : > { %363 = vadd.xlane.f32.xlu1 %v362_v26  ;;  %360 = vadd.xlane.f32.xlu0 %v359_v27 }
 0x10b   : > { %369 = vadd.xlane.f32.xlu1 %v368_v30  ;;  %366 = vadd.xlane.f32.xlu0 %v365_v31 }
 0x18c   : > { %v330_v33 = vpop.xlane.xlu1 %329  ;;  %v327_v34 = vpop.xlane.xlu0 %326 }
 0x190   : > { %v336_v35 = vpop.xlane.xlu1 %335  ;;  %v333_v36 = vpop.xlane.xlu0 %332 }
 0x194   : > { %v364_v37 = vpop.xlane.xlu1 %363  ;;  %v361_v38 = vpop.xlane.xlu0 %360 }
 0x195   : > { %v372_v39 = vadd.f32 %v364_v37, %v330_v33  ;;  %v371_v40 = vadd.f32 %v361_v38, %v327_v34  ;;  %v2487_v33 = vshrl.u32 %v452_v23, 7 }
 0x197   : > { %v1836_v41 = vmul.f32 -1.442695, %v372_v39  ;;  %v1835_v42 = vmul.f32 -1.442695, %v371_v40 }
 0x198   : > { %v370_v43 = vpop.xlane.xlu1 %369  ;;  %v367_v44 = vpop.xlane.xlu0 %366 }
 0x199   : > { %2020 = vpow2.f32 %v1836_v41  ;;  %v374_v45 = vadd.f32 %v370_v43, %v336_v35  ;;  %v373_v46 = vadd.f32 %v367_v44, %v333_v36 }
 0x19a   : > { %2022 = vpow2.f32 %v1835_v42  ;;  %v454_v42 = vsub.s32 %v451_v32, %v2487_v33 }
 0x19b   : > { %v1838_v47 = vmul.f32 -1.442695, %v374_v45  ;;  %v1837_v48 = vmul.f32 -1.442695, %v373_v46 }
 0x19d   : > { %2024 = vpow2.f32 %v1838_v47 }
 0x19e   : > { %2026 = vpow2.f32 %v1837_v48 }
 0x1a3   : > { %v2021_v49 = vpop.eup %2020 }
 0x1a4   : > { %v2023_v50 = vpop.eup %2022  ;;  %v388_v51 = vadd.f32 1.0, %v2021_v49 }
 0x1a5   : > { %v387_v52 = vadd.f32 1.0, %v2023_v50 }
 0x1a6   : > { %2028 = vrcp.f32 %v388_v51 }
 0x1a7   : > { %v2025_v53 = vpop.eup %2024  ;;  %2030 = vrcp.f32 %v387_v52 }
 0x1a8   : > { %v2027_v54 = vpop.eup %2026  ;;  %v390_v55 = vadd.f32 1.0, %v2025_v53 }
 0x1a9   : > { %v389_v56 = vadd.f32 1.0, %v2027_v54 }
 0x1aa   : > { %2032 = vrcp.f32 %v390_v55  ;;  %v630_v55 = vstv %s1852_s14  ;;  %s1847_s14 = sld [smem:[#allocation8 + $0x9]] }
 0x1ab   : > { %2034 = vrcp.f32 %v389_v56  ;;  %v620_v56 = vstv %s1845_s24  ;;  %s1861_s24 = sld [smem:[#allocation8 + $0x17]] }
 0x1b0   : > { %v2029_v57 = vpop.eup %2028  ;;  %v932_v21 = vstv %s1847_s14  ;;  %s1874_s14 = sld [smem:[#allocation8 + $0x24]] }
 0x1b1   : > { %v2031_v58 = vpop.eup %2030  ;;  %v2447_v59 = vmul.f32 %v2029_v57, %v2373_v2  ;;  %v2450_v60 = vmul.f32 %v2029_v57, %v2380_v5  ;;  %v950_v22 = vstv %s1861_s24  ;;  %s1881_s24 = sld [smem:[#allocation8 + $0x2b]] }
 0x1b2   : > { %v2453_v61 = vmul.f32 %v2031_v58, %v2367_v0  ;;  %v2456_v62 = vmul.f32 %v2031_v58, %v2370_v1 }
 0x1b4   : > { %v2033_v63 = vpop.eup %2032  ;;  %v425_v2 = vadd.f32 %v2447_v59, %v2453_v61  ;;  %v434_v5 = vadd.f32 %v2450_v60, %v2456_v62 }
 0x1b5   : > { %v2035_v3 = vpop.eup %2034  ;;  %v2459_v4 = vmul.f32 %v2033_v63, %v2397_v12  ;;  %v2462_v6 = vmul.f32 %v2033_v63, %v2400_v13 }
 0x1b6   : > { %v2469_v0 = vmul.f32 %v2035_v3, %v2387_v8  ;;  %v2472_v1 = vmul.f32 %v2035_v3, %v2390_v9 }
 0x1b7   : > { %v408_v7 = vmax.f32 %v2447_v59, %v2459_v4  ;;  %v417_v12 = vmax.f32 %v2450_v60, %v2462_v6 }
 0x1b8   : > { %v407_v13 = vmax.f32 %v2453_v61, %v2469_v0  ;;  %v416_v10 = vmax.f32 %v2456_v62, %v2472_v1  ;;  %v426_v11 = vadd.f32 %v425_v2, %v2469_v0  ;;  %v435_v8 = vadd.f32 %v434_v5, %v2472_v1 }
 0x1b9   : > { %v640_v2 = vstv %s1859_s29  ;;  %v662_v5 = vstv %s1873_s9  ;;  %s2179_s29 = smov 64   ;;  %s1854_s9 = sld [smem:[#allocation8 + $0x10]] }
 0x1ba   : > { %v409_v14 = vmax.f32 %v407_v13, %v408_v7  ;;  %v418_v15 = vmax.f32 %v416_v10, %v417_v12  ;;  %v427_v9 = vadd.f32 %v426_v11, %v2459_v4  ;;  %v436_v16 = vadd.f32 %v435_v8, %v2462_v6 }
 0x1bb   : > { %v652_v13 = vstv %s1866_s17  ;;  %v791_v10 = vstv %s1853_s13  ;;  %s1855_s17 = sld [smem:[#allocation8 + $0x11]]  ;;  %s2180_s13 = smov 32  }
 0x1bc   : > { %v410_v17 = vrot.slane %v409_v14, 4  ;;  %v419_v18 = vrot.slane %v418_v15, 4  ;;  %v428_v19 = vrot.slane %v427_v9, 4  ;;  %v437_v20 = vrot.slane %v436_v16, 4 }
 0x1be   : > { %v411_v24 = vmax.f32 %v409_v14, %v410_v17  ;;  %v420_v25 = vmax.f32 %v418_v15, %v419_v18  ;;  %v429_v26 = vadd.f32 %v428_v19, %v427_v9  ;;  %v438_v27 = vadd.f32 %v437_v20, %v436_v16 }
 0x1bf   : > { %v672_v14 = vstv %s1880_s18  ;;  %v800_v15 = vstv %s1860_s19  ;;  %v782_v17 = vstv %s1846_s10  ;;  %v1082_v18 = vstv %s1848_s15  ;;  %s1867_s18 = sld [smem:[#allocation8 + $0x1d]]  ;;  %s1868_s19 = sld [smem:[#allocation8 + $0x1e]] }
 0x1c0   : > { %v412_v28 = vrot.slane %v411_v24, 2  ;;  %v421_v29 = vrot.slane %v420_v25, 2  ;;  %v430_v30 = vrot.slane %v429_v26, 2  ;;  %v439_v31 = vrot.slane %v438_v27, 2  ;;  %s1849_s10 = sld [smem:[#allocation8 + $0xb]]  ;;  %s1850_s15 = sld [smem:[#allocation8 + $0xc]] }
 0x1c2   : > { %v413_v34 = vmax.f32 %v411_v24, %v412_v28  ;;  %v422_v35 = vmax.f32 %v420_v25, %v421_v29  ;;  %v431_v36 = vadd.f32 %v430_v30, %v429_v26  ;;  %v440_v37 = vadd.f32 %v439_v31, %v438_v27 }
 0x1c3   : > { %v941_v26 = vstv %s1854_s9  ;;  %v1091_v27 = vstv %s1855_s17  ;;  %s1856_s9 = sld [smem:[#allocation8 + $0x12]]  ;;  %s1863_s17 = sld [smem:[#allocation8 + $0x19]] }
 0x1c4   : > { %v414_v38 = vrot.slane %v413_v34, 1  ;;  %v423_v39 = vrot.slane %v422_v35, 1  ;;  %v432_v40 = vrot.slane %v431_v36, 1  ;;  %v441_v41 = vrot.slane %v440_v37, 1 }
 0x1c5   : > { %v809_v30 = vstv %s1867_s18  ;;  %v959_v31 = vstv %s1868_s19  ;;  %s1862_s18 = sld [smem:[#allocation8 + $0x18]]  ;;  %s1851_s19 = sld [smem:[#allocation8 + $0xd]] }
 0x1c6   : > { %v415_v43 = vmax.f32 %v413_v34, %v414_v38  ;;  %v424_v44 = vmax.f32 %v422_v35, %v423_v39  ;;  %v433_v45 = vadd.f32 %v432_v40, %v431_v36  ;;  %v442_v46 = vadd.f32 %v441_v41, %v440_v37 }
 0x1c7   : > { %v1231_v35 = vstv %s1849_s10  ;;  %v1381_v36 = vstv %s1850_s15  ;;  %v818_v39 = vstv %s1874_s14  ;;  %v827_v40 = vstv %s1881_s24  ;;  %s1875_s10 = sld [smem:[#allocation8 + $0x25]]  ;;  %s1882_s15 = sld [smem:[#allocation8 + $0x2c]] }
 0x1c8   : > { %v443_v47 = vmul.f32 0.03125, %v433_v45  ;;  %v444_v48 = vmul.f32 0.03125, %v442_v46  ;;  %v448_v49 = vcombine.low %v415_v43, %v424_v44  ;;  %s1857_s14 = sld [smem:[#allocation8 + $0x13]]  ;;  %s1864_s24 = sld [smem:[#allocation8 + $0x1a]] }
 0x1c9   : > { %v1240_v43 = vstv %s1856_s9  ;;  %v1249_v44 = vstv %s1863_s17  ;;  %s1869_s9 = sld [smem:[#allocation8 + $0x1f]]  ;;  %s1876_s17 = sld [smem:[#allocation8 + $0x26]] }
 0x1ca   : > { %v455_v50 = vrot.slane %v448_v49, %v454_v42  ;;  %v472_v51 = vcombine.low %v443_v47, %v444_v48 }
 0x1cb   : > { %v1101_v48 = vstv %s1862_s18  ;;  %v1531_v49 = vstv %s1851_s19  ;;  %s1870_s18 = sld [smem:[#allocation8 + $0x20]]  ;;  %s1877_s19 = sld [smem:[#allocation8 + $0x27]] }
 0x1cc   : > { %v462_v52 = vrot.slane %v455_v50, %v454_v42  ;;  %v479_v53 = vrot.slane %v472_v51, %v454_v42 }
 0x1ce   : > { %469 = vst.msk [vmem:[#allocation2 + $0x2] ss:$2 sm:$0x3] %vm466_vm1, %v462_v52  ;;  %v486_v54 = vrot.slane %v479_v53, %v454_v42  ;;  %v968_v52 = vstv %s1875_s10  ;;  %v977_v53 = vstv %s1882_s15  ;;  %s1858_s10 = sld [smem:[#allocation8 + $0x14]]  ;;  %s1865_s15 = sld [smem:[#allocation8 + $0x1b]] }
 0x1d0   : > { %489 = vst.msk [vmem:[#allocation2 + $0x3] ss:$2 sm:$0x3] %vm466_vm1, %v486_v54  ;;  %vm1369_vm1 = vcmask 384000  }
 0x1d5   : > { %v2491_v57 = vld [vmem:[#allocation2] ss:$2 sm:$0x7] }
 0x1d6   : > { %v631_v58 = vmul.f32 %v630_v55, %v2491_v57  ;;  %v621_v63 = vmul.f32 %v620_v56, %v2491_v57  ;;  %v2495_v3 = vld [vmem:[#allocation2 + $0x2] ss:$2 sm:$0x7]  ;;  %v641_v7 = vmul.f32 %v640_v2, %v2491_v57  ;;  %v792_v8 = vmul.f32 %v791_v10, %v2491_v57 }
 0x1d7   : > { %v663_v12 = vmul.f32 %v662_v5, %v2495_v3  ;;  %v653_v11 = vmul.f32 %v652_v13, %v2495_v3  ;;  %v673_v9 = vmul.f32 %v672_v14, %v2495_v3  ;;  %v801_v16 = vmul.f32 %v800_v15, %v2491_v57  ;;  %v1100_v47 = vld [vmem:[#allocation2 + $0x2] ss:$2 sm:$0x3] }
 0x1d8   : > { %633 = vrot.lane.b32.xlu1 %v631_v58, %s2175_s26  ;;  %623 = vrot.lane.b32.xlu0 %v621_v63, %s3095_s27  ;;  %v783_v19 = vmul.f32 %v782_v17, %v2491_v57  ;;  %v1083_v20 = vmul.f32 %v1082_v18, %v2491_v57  ;;  %v933_v24 = vmul.f32 %v932_v21, %v2491_v57  ;;  %v1390_v56 = vstv %s1857_s14  ;;  %s1871_s14 = sld [smem:[#allocation8 + $0x21]] }
 0x1d9   : > { %v951_v25 = vmul.f32 %v950_v22, %v2491_v57  ;;  %v942_v28 = vmul.f32 %v941_v26, %v2491_v57  ;;  %v1092_v29 = vmul.f32 %v1091_v27, %v2491_v57  ;;  %v810_v32 = vmul.f32 %v809_v30, %v2495_v3 }
 0x1da   : > { %v960_v34 = vmul.f32 %v959_v31, %v2495_v3  ;;  %v1232_v37 = vmul.f32 %v1231_v35, %v2491_v57  ;;  %v1382_v38 = vmul.f32 %v1381_v36, %v2491_v57  ;;  %v819_v41 = vmul.f32 %v818_v39, %v2495_v3  ;;  %v2572_v31 = vld [vmem:[#allocation2 + $0x1] ss:$2 sm:$0x7] }
 0x1db   : > { %v828_v42 = vmul.f32 %v827_v40, %v2495_v3  ;;  %v1241_v45 = vmul.f32 %v1240_v43, %v2491_v57  ;;  %v1250_v46 = vmul.f32 %v1249_v44, %v2495_v3  ;;  %v1102_v50 = vmul.f32 %v1101_v48, %v1100_v47 }
 0x1dc   : > { %643 = vrot.lane.b32.xlu1 %v641_v7, %s2177_s30  ;;  %665 = vrot.lane.b32.xlu0 %v663_v12, %s2178_s8  ;;  %v1532_v51 = vmul.f32 %v1531_v49, %v2491_v57  ;;  %v969_v54 = vmul.f32 %v968_v52, %v2495_v3  ;;  %v978_v55 = vmul.f32 %v977_v53, %v2495_v3  ;;  %v1399_v58 = vstv %s1864_s24  ;;  %s1878_s24 = sld [smem:[#allocation8 + $0x28]]  ;;  %v2594_v52 = vld [vmem:[#allocation2 + $0x3] ss:$2 sm:$0x7] }
 0x1dd   : > { %v1391_v63 = vmul.f32 %v1390_v56, %v2491_v57  ;;  %v1400_v2 = vmul.f32 %v1399_v58, %v2495_v3  ;;  %v1110_v5 = vstv %s1869_s9  ;;  %v1119_v7 = vstv %s1876_s17  ;;  %s1883_s9 = sld [smem:[#allocation8 + $0x2d]]  ;;  %s1879_s17 = sld [smem:[#allocation8 + $0x29]] }
 0x1de   : > { %v1111_v12 = vmul.f32 %v1110_v5, %v2495_v3  ;;  %v1120_v13 = vmul.f32 %v1119_v7, %v2495_v3  ;;  %v1258_v10 = vstv %s1870_s18  ;;  %v1540_v15 = vstv %s1858_s10  ;;  %s1884_s18 = sld [smem:[#allocation8 + $0x2e]]  ;;  %s1872_s10 = sld [smem:[#allocation8 + $0x22]] }
 0x1df   : > { %v1408_v18 = vstv %s1871_s14  ;;  %s1885_s14 = sld [smem:[#allocation8 + $0x2f]] }
 0x1e0   : > { %655 = vrot.lane.b32.xlu1 %v653_v11, %s2179_s29  ;;  %794 = vrot.lane.b32.xlu0 %v792_v8, %s2175_s26  ;;  %v1267_v11 = vstv %s1877_s19  ;;  %v1259_v8 = vmul.f32 %v1258_v10, %v2495_v3  ;;  %s1886_s19 = sld [smem:[#allocation8 + $0x30]] }
 0x1e1   : > { %v1268_v14 = vmul.f32 %v1267_v11, %v2495_v3 }
 0x1e3   : > { %v1128_v22 = vstv %s1883_s9  ;;  %s1895_s9 = sld [smem:[#allocation8 + $0x39]] }
 0x1e4   : > { %675 = vrot.lane.b32.xlu1 %v673_v9, %s2180_s13  ;;  %803 = vrot.lane.b32.xlu0 %v801_v16, %s2177_s30  ;;  %v1549_v9 = vstv %s1865_s15  ;;  %v1541_v16 = vmul.f32 %v1540_v15, %v2491_v57  ;;  %s1894_s15 = sld [smem:[#allocation8 + $0x38]]  ;;  %v1276_v27 = vstv %s1884_s18 }
 0x1e5   : > { %v1550_v17 = vmul.f32 %v1549_v9, %v2495_v3  ;;  %s1902_s18 = sld [smem:[#allocation8 + $0x40]] }
 0x1e8   : > { %785 = vrot.lane.b32.xlu1 %v783_v19, %s3095_s27  ;;  %1085 = vrot.lane.b32.xlu0 %v1083_v20, %s3095_s27  ;;  %v1417_v19 = vstv %s1878_s24  ;;  %v1409_v20 = vmul.f32 %v1408_v18, %v2495_v3  ;;  %s1901_s24 = sld [smem:[#allocation8 + $0x3f]] }
 0x1e9   : > { %v1418_v21 = vmul.f32 %v1417_v19, %v2495_v3 }
 0x1ec   : > { %935 = vrot.lane.b32.xlu1 %v933_v24, %s3095_s27  ;;  %953 = vrot.lane.b32.xlu0 %v951_v25, %s2177_s30  ;;  %v1567_v24 = vstv %s1879_s17  ;;  %v1129_v25 = vmul.f32 %v1128_v22, %v2495_v3  ;;  %s1896_s17 = sld [smem:[#allocation8 + $0x3a]] }
 0x1ed   : > { %v1568_v26 = vmul.f32 %v1567_v24, %v2495_v3 }
 0x1f0   : > { %944 = vrot.lane.b32.xlu1 %v942_v28, %s2175_s26  ;;  %1094 = vrot.lane.b32.xlu0 %v1092_v29, %s2175_s26  ;;  %v1576_v28 = vstv %s1886_s19  ;;  %v1277_v29 = vmul.f32 %v1276_v27, %v2495_v3  ;;  %s1908_s19 = sld [smem:[#allocation8 + $0x46]] }
 0x1f1   : > { %v1577_v30 = vmul.f32 %v1576_v28, %v2495_v3 }
 0x1f4   : > { %812 = vrot.lane.b32.xlu1 %v810_v32, %s2179_s29  ;;  %962 = vrot.lane.b32.xlu0 %v960_v34, %s2179_s29  ;;  %v1558_v32 = vstv %s1872_s10  ;;  %v687_v34 = vstv %s1894_s15  ;;  %s1909_s10 = sld [smem:[#allocation8 + $0x47]]  ;;  %s1903_s15 = sld [smem:[#allocation8 + $0x41]] }
 0x1f5   : > { %v1559_v35 = vmul.f32 %v1558_v32, %v2495_v3  ;;  %v688_v36 = vmul.f32 %v687_v34, %v2572_v31 }
 0x1f8   : > { %1234 = vrot.lane.b32.xlu1 %v1232_v37, %s3095_s27  ;;  %1384 = vrot.lane.b32.xlu0 %v1382_v38, %s3095_s27  ;;  %v1426_v37 = vstv %s1885_s14  ;;  %v696_v38 = vstv %s1901_s24  ;;  %s1897_s14 = sld [smem:[#allocation8 + $0x3b]]  ;;  %s1915_s24 = sld [smem:[#allocation8 + $0x4d]] }
 0x1f9   : > { %v1427_v39 = vmul.f32 %v1426_v37, %v2495_v3  ;;  %v697_v40 = vmul.f32 %v696_v38, %v2572_v31  ;;  %v1158_v38 = vld [vmem:[#allocation2 + $0x3] ss:$2 sm:$0x3] }
 0x1fa   : > { %v857_v48 = vstv %s1909_s10  ;;  %v998_v49 = vstv %s1903_s15  ;;  %s1904_s10 = sld [smem:[#allocation8 + $0x42]]  ;;  %s1917_s15 = sld [smem:[#allocation8 + $0x4f]] }
 0x1fc   : > { %821 = vrot.lane.b32.xlu1 %v819_v41, %s2178_s8  ;;  %830 = vrot.lane.b32.xlu0 %v828_v42, %s2180_s13  ;;  %v839_v41 = vstv %s1895_s9  ;;  %v989_v42 = vstv %s1896_s17  ;;  %s1916_s9 = sld [smem:[#allocation8 + $0x4e]]  ;;  %s1910_s17 = sld [smem:[#allocation8 + $0x48]] }
 0x1fd   : > { %v840_v43 = vmul.f32 %v839_v41, %v2572_v31  ;;  %v990_v44 = vmul.f32 %v989_v42, %v2572_v31 }
 0x1fe   : > { %v1140_v53 = vstv %s1897_s14  ;;  %s1923_s14 = sld [smem:[#allocation8 + $0x55]] }
 0x200   : > { %1243 = vrot.lane.b32.xlu1 %v1241_v45, %s2175_s26  ;;  %1252 = vrot.lane.b32.xlu0 %v1250_v46, %s2177_s30  ;;  %v848_v45 = vstv %s1902_s18  ;;  %v705_v46 = vstv %s1908_s19  ;;  %s1898_s18 = sld [smem:[#allocation8 + $0x3c]] }
 0x201   : > { %v849_v3 = vmul.f32 %v848_v45, %v2572_v31  ;;  %v706_v47 = vmul.f32 %v705_v46, %v2572_v31  ;;  %s1922_s19 = sld [smem:[#allocation8 + $0x54]]  ;;  %v1149_v11 = vstv %s1904_s10 }
 0x202   : > { %v866_v58 = vstv %s1916_s9  ;;  %s490_s9 = sld [smem:[#allocation8]]  ;;  %s2626_s10 = sld [smem:[#allocation8 + $0x5c]] }
 0x204   : > { %1104 = vrot.lane.b32.xlu1 %v1102_v50, %s2177_s30  ;;  %1534 = vrot.lane.b32.xlu0 %v1532_v51, %s3095_s27  ;;  %v858_v50 = vmul.f32 %v857_v48, %v2572_v31  ;;  %v999_v51 = vmul.f32 %v998_v49, %v2572_v31  ;;  %v875_v9 = vstv %s1923_s14  ;;  %s2634_s14 = sld [smem:[#allocation8 + $0x4a]] }
 0x206   : > { %v1288_v7 = vstv %s1898_s18  ;;  %s2616_s18 = sld [smem:[#allocation8 + $0x49]] }
 0x208   : > { %971 = vrot.lane.b32.xlu1 %v969_v54, %s2178_s8  ;;  %980 = vrot.lane.b32.xlu0 %v978_v55, %s2180_s13  ;;  %v716_v54 = vstv %s1915_s24  ;;  %v1141_v55 = vmul.f32 %v1140_v53, %v2572_v31  ;;  %s1899_s24 = sld [smem:[#allocation8 + $0x3d]]  ;;  %v884_v48 = vstv %s2626_s10 }
 0x209   : > { %v717_v56 = vmul.f32 %v716_v54, %v2594_v52  ;;  %s2671_s10 = sld [smem:[#allocation8 + $0x5d]] }
 0x20a   : > { %v1306_v53 = vstv %s2634_s14  ;;  %s2682_s14 = sld [smem:[#allocation8 + $0x4b]] }
 0x20c   : > { %1393 = vrot.lane.b32.xlu1 %v1391_v63, %s2175_s26  ;;  %1402 = vrot.lane.b32.xlu0 %v1400_v2, %s2177_s30  ;;  %v1007_v63 = vstv %s1910_s17  ;;  %v867_v2 = vmul.f32 %v866_v58, %v2594_v52  ;;  %s2608_s17 = sld [smem:[#allocation8 + $0x43]]  ;;  %v885_v58 = vmul.f32 %v884_v48, %v2594_v52 }
 0x20d   : > { %v1008_v5 = vmul.f32 %v1007_v63, %v2572_v31 }
 0x210   : > { %1113 = vrot.lane.b32.xlu1 %v1111_v12, %s2179_s29  ;;  %1122 = vrot.lane.b32.xlu0 %v1120_v13, %s2178_s8  ;;  %v725_v12 = vstv %s1922_s19  ;;  %v1289_v13 = vmul.f32 %v1288_v7, %v2572_v31  ;;  %s2618_s19 = sld [smem:[#allocation8 + $0x56]]  ;;  %v1456_v48 = vstv %s2682_s14  ;;  %s2748_s14 = sld [smem:[#allocation8 + $0x32]] }
 0x211   : > { %v726_v10 = vmul.f32 %v725_v12, %v2594_v52 }
 0x214   : > { %1261 = vrot.lane.b32.xlu1 %v1259_v8, %s2179_s29  ;;  %1270 = vrot.lane.b32.xlu0 %v1268_v14, %s2178_s8  ;;  %v1016_v8 = vstv %s1917_s15  ;;  %v1150_v14 = vmul.f32 %v1149_v11, %v2572_v31  ;;  %s2628_s15 = sld [smem:[#allocation8 + $0x44]] }
 0x215   : > { %v1017_v15 = vmul.f32 %v1016_v8, %v2594_v52 }
 0x218   : > { %1543 = vrot.lane.b32.xlu1 %v1541_v16, %s2175_s26  ;;  %1552 = vrot.lane.b32.xlu0 %v1550_v17, %s2177_s30  ;;  %v1438_v16 = vstv %s1899_s24  ;;  %v617_v17 = vstv %s490_s9  ;;  %s2643_s24 = sld [smem:[#allocation8 + $0x31]] }
 0x219   : > { %v618_v27 = vmul.f32 %v617_v17, %v2491_v57  ;;  %s2647_s9 = sld [smem:[#allocation8 + $0x1]]  ;;  %v1307_v17 = vmul.f32 %v1306_v53, %v2594_v52 }
 0x21a   : > { %v1447_v49 = vstv %s2628_s15  ;;  %s2673_s15 = sld [smem:[#allocation8 + $0x45]] }
 0x21b   : > { %v1448_v63 = vmul.f32 %v1447_v49, %v2572_v31 }
 0x21c   : > { %1411 = vrot.lane.b32.xlu1 %v1409_v20, %s2179_s29  ;;  %1420 = vrot.lane.b32.xlu0 %v1418_v21, %s2178_s8  ;;  %v876_v20 = vmul.f32 %v875_v9, %v2594_v52  ;;  %v1439_v21 = vmul.f32 %v1438_v16, %v2572_v31 }
 0x21e   : > { %v684_v12 = vstv %s2643_s24  ;;  %s2708_s24 = sld [smem:[#allocation8 + $0x4c]] }
 0x21f   : > { %v779_v11 = vstv %s2647_s9  ;;  %s3106_s9 = smov 112  }
 0x220   : > { %1131 = vrot.lane.b32.xlu1 %v1129_v25, %s2180_s13  ;;  %1570 = vrot.lane.b32.xlu0 %v1568_v26, %s2178_s8  ;;  %v1297_v25 = vstv %s2608_s17  ;;  %v734_v26 = vstv %s2610_s12  ;;  %s2638_s12 = sld [smem:[#allocation8 + $0x50]]  ;;  %s2650_s17 = sld [smem:[#allocation8 + $0x3]] }
 0x221   : > { %v1298_v34 = vmul.f32 %v1297_v25, %v2572_v31  ;;  %v780_v25 = vmul.f32 %v779_v11, %v2491_v57 }
 0x224   : > { %1279 = vrot.lane.b32.xlu1 %v1277_v29, %s2180_s13  ;;  %1579 = vrot.lane.b32.xlu0 %v1577_v30, %s2180_s13 }
 0x226   : > { %v1168_v7 = vstv %s2638_s12  ;;  %v1079_v8 = vstv %s2650_s17  ;;  %s2689_s12 = sld [smem:[#allocation8 + $0x58]]  ;;  %s2716_s17 = sld [smem:[#allocation8 + $0x4]] }
 0x228   : > { %1561 = vrot.lane.b32.xlu1 %v1559_v35, %s2179_s29  ;;  %690 = vrot.lane.b32.xlu0 %v688_v36, %s3095_s27  ;;  %v735_v35 = vmul.f32 %v734_v26, %v2594_v52  ;;  %v1080_v26 = vmul.f32 %v1079_v8, %v2491_v57  ;;  %v1457_v8 = vmul.f32 %v1456_v48, %v2594_v52 }
 0x22c   : > { %1429 = vrot.lane.b32.xlu1 %v1427_v39, %s2180_s13  ;;  %699 = vrot.lane.b32.xlu0 %v697_v40, %s2175_s26  ;;  %v1159_v39 = vstv %s2616_s18  ;;  %v1025_v40 = vstv %s2618_s19  ;;  %s2659_s18 = sld [smem:[#allocation8 + $0x51]]  ;;  %s2665_s19 = sld [smem:[#allocation8 + $0x2]] }
 0x22d   : > { %v1160_v45 = vmul.f32 %v1159_v39, %v1158_v38  ;;  %v1026_v46 = vmul.f32 %v1025_v40, %v2594_v52 }
 0x230   : > { %842 = vrot.lane.b32.xlu1 %v840_v43, %s3095_s27  ;;  %992 = vrot.lane.b32.xlu0 %v990_v44, %s3095_s27 }
 0x234   : > { %851 = vrot.lane.b32.xlu1 %v849_v3, %s2175_s26  ;;  %708 = vrot.lane.b32.xlu0 %v706_v47, %s2177_s30 }
 0x238   : > { %860 = vrot.lane.b32.xlu1 %v858_v50, %s2177_s30  ;;  %1001 = vrot.lane.b32.xlu0 %v999_v51, %s2175_s26 }
 0x23c   : > { %1143 = vrot.lane.b32.xlu1 %v1141_v55, %s3095_s27  ;;  %719 = vrot.lane.b32.xlu0 %v717_v56, %s2179_s29 }
 0x240   : > { %869 = vrot.lane.b32.xlu1 %v867_v2, %s2179_s29  ;;  %1010 = vrot.lane.b32.xlu0 %v1008_v5, %s2177_s30 }
 0x244   : > { %1291 = vrot.lane.b32.xlu1 %v1289_v13, %s3095_s27  ;;  %728 = vrot.lane.b32.xlu0 %v726_v10, %s2178_s8 }
 0x248   : > { %1152 = vrot.lane.b32.xlu1 %v1150_v14, %s2175_s26  ;;  %1019 = vrot.lane.b32.xlu0 %v1017_v15, %s2179_s29 }
 0x24a   : > { %v634_v18 = vpop.permute.xlu1 %633  ;;  %v624_v19 = vpop.permute.xlu0 %623 }
 0x24b   : > { %v635_v22 = vrot.slane %v634_v18, 1  ;;  %v625_v24 = vrot.slane %v624_v19, 1 }
 0x24c   : > { %878 = vrot.lane.b32.xlu1 %v876_v20, %s2178_s8  ;;  %1441 = vrot.lane.b32.xlu0 %v1439_v21, %s3095_s27  ;;  %s2652_s27 = sld [smem:[#allocation8 + $0x3e]] }
 0x24d   : > { %v627_v28 = vsel %vm626_vm2, %v624_v19, %v625_v24  ;;  %v637_v36 = vsel %vm636_vm3, %v634_v18, %v635_v22  ;;  %v1169_v18 = vmul.f32 %v1168_v7, %v2594_v52  ;;  %v685_v19 = vmul.f32 %v684_v12, %v2572_v31 }
 0x24e   : > { %v629_v29 = vadd.f32 %v627_v28, %v618_v27  ;;  %v644_v30 = vpop.permute.xlu1 %643  ;;  %v666_v32 = vpop.permute.xlu0 %665  ;;  %v1315_v24 = vstv %s2659_s18  ;;  %s2718_s18 = sld [smem:[#allocation8 + $0x5]] }
 0x24f   : > { %v645_v37 = vrot.slane %v644_v30, 1  ;;  %v667_v3 = vrot.slane %v666_v32, 7  ;;  %v1316_v39 = vmul.f32 %v1315_v24, %v2594_v52 }
 0x250   : > { %v639_v41 = vadd.f32 %v637_v36, %v629_v29  ;;  %1300 = vrot.lane.b32.xlu1 %v1298_v34, %s2175_s26  ;;  %737 = vrot.lane.b32.xlu0 %v735_v35, %s2180_s13 }
 0x251   : > { %v647_v42 = vsel %vm646_vm4, %v644_v30, %v645_v37  ;;  %v669_v2 = vsel %vm668_vm6, %v667_v3, %v666_v32  ;;  %v929_v32 = vstv %s2665_s19  ;;  %s2722_s19 = sld [smem:[#allocation8 + $0x52]] }
 0x252   : > { %v656_v43 = vpop.permute.xlu1 %655  ;;  %v2654_v44 = vpop.permute.xlu0 %794  ;;  %v649_v50 = vadd.f32 %v647_v42, %v639_v41  ;;  %v1588_v14 = vstv %s2652_s27  ;;  %s2700_s27 = sld [smem:[#allocation8 + $0x57]]  ;;  %v1034_v42 = vstv %s2671_s10 }
 0x253   : > { %v657_v47 = vrot.slane %v656_v43, 7  ;;  %v796_v20 = vrot.slane %v2654_v44, 1  ;;  %v1589_v38 = vmul.f32 %v1588_v14, %v2572_v31  ;;  %s2725_s10 = sld [smem:[#allocation8 + $0x5f]] }
 0x254   : > { %1162 = vrot.lane.b32.xlu1 %v1160_v45, %s2177_s30  ;;  %1028 = vrot.lane.b32.xlu0 %v1026_v46, %s2178_s8  ;;  %v930_v46 = vmul.f32 %v929_v32, %v2491_v57 }
 0x255   : > { %v659_v51 = vsel %vm658_vm5, %v657_v47, %v656_v43  ;;  %v797_v40 = vsel %vm636_vm3, %v2654_v44, %v796_v20  ;;  %v1597_v43 = vstv %s2673_s15  ;;  %s2740_s15 = sld [smem:[#allocation8 + $0x53]] }
 0x256   : > { %v661_v54 = vadd.f32 %v659_v51, %v649_v50  ;;  %v676_v55 = vpop.permute.xlu1 %675  ;;  %v804_v56 = vpop.permute.xlu0 %803  ;;  %v1035_v51 = vmul.f32 %v1034_v42, %v2594_v52  ;;  %v1598_v53 = vmul.f32 %v1597_v43, %v2572_v31 }
 0x257   : > { %v677_v5 = vrot.slane %v676_v55, 7  ;;  %v805_v28 = vrot.slane %v804_v56, 1 }
 0x258   : > { %v671_v13 = vadd.f32 %v669_v2, %v661_v54  ;;  %887 = vrot.lane.b32.xlu1 %v885_v58, %s2180_s13  ;;  %1450 = vrot.lane.b32.xlu0 %v1448_v63, %s2175_s26  ;;  %v1324_v63 = vstv %s2689_s12  ;;  %v1177_v7 = vstv %s2700_s27  ;;  %s2754_s12 = sld [smem:[#allocation8 + $0x59]]  ;;  %s2758_s27 = sld [smem:[#allocation8 + $0x5a]] }
 0x259   : > { %v679_v10 = vsel %vm678_vm7, %v677_v5, %v676_v55  ;;  %v806_v3 = vsel %vm646_vm4, %v804_v56, %v805_v28  ;;  %v1325_v14 = vmul.f32 %v1324_v63, %v2594_v52 }
 0x25a   : > { %v681_v15 = vadd.f32 %v679_v10, %v671_v13  ;;  %v786_v9 = vpop.permute.xlu1 %785  ;;  %v1086_v16 = vpop.permute.xlu0 %1085 }
 0x25b   : > { %v787_v21 = vrot.slane %v786_v9, 1  ;;  %v1087_v22 = vrot.slane %v1086_v16, 1 }
 0x25c   : > { %1309 = vrot.lane.b32.xlu1 %v1307_v17, %s2177_s30  ;;  %1171 = vrot.lane.b32.xlu0 %v1169_v18, %s2179_s29  ;;  %v2695_v27 = vadd.f32 %v685_v19, %v681_v15  ;;  %v1606_v17 = vstv %s2708_s24  ;;  %s2766_s24 = sld [smem:[#allocation8 + $0x6]] }
 0x25d   : > { %v788_v29 = vsel %vm626_vm2, %v786_v9, %v787_v21  ;;  %v1088_v30 = vsel %vm626_vm2, %v1086_v16, %v1087_v22  ;;  %v1228_v21 = vstv %s2716_s17  ;;  %v1378_v22 = vstv %s2718_s18  ;;  %s2792_s17 = sld [smem:[#allocation8 + $0x33]]  ;;  %s1892_s18 = sld [smem:[#allocation8 + $0x36]] }
 0x25e   : > { %v790_v34 = vadd.f32 %v788_v29, %v780_v25  ;;  %v1090_v35 = vadd.f32 %v1088_v30, %v1080_v26  ;;  %v936_v36 = vpop.permute.xlu1 %935  ;;  %v954_v37 = vpop.permute.xlu0 %953  ;;  %v1178_v29 = vmul.f32 %v1177_v7, %v2594_v52  ;;  %v1607_v30 = vmul.f32 %v1606_v17, %v2594_v52 }
 0x25f   : > { %v937_v41 = vrot.slane %v936_v36, 1  ;;  %v955_v55 = vrot.slane %v954_v37, 1  ;;  %v1474_v63 = vstv %s2754_s12  ;;  %s2186_s12 = smov 45  }
 0x260   : > { %v799_v45 = vadd.f32 %v797_v40, %v790_v34  ;;  %1591 = vrot.lane.b32.xlu1 %v1589_v38, %s3106_s9  ;;  %1318 = vrot.lane.b32.xlu0 %v1316_v39, %s2179_s29  ;;  %v1379_v38 = vmul.f32 %v1378_v22, %v2491_v57  ;;  %s2785_s9 = sld [smem:[#allocation8 + $0x61]]  ;;  %v1475_v17 = vmul.f32 %v1474_v63, %v2594_v52 }
 0x261   : > { %v938_v47 = vsel %vm626_vm2, %v936_v36, %v937_v41  ;;  %v956_v15 = vsel %vm646_vm4, %v954_v37, %v955_v55  ;;  %v1333_v36 = vstv %s2725_s10  ;;  %v1229_v37 = vmul.f32 %v1228_v21, %v2491_v57  ;;  %s2181_s10 = smov 51  }
 0x262   : > { %v940_v44 = vadd.f32 %v938_v47, %v930_v46  ;;  %v945_v49 = vpop.permute.xlu1 %944  ;;  %v1095_v50 = vpop.permute.xlu0 %1094  ;;  %v808_v54 = vadd.f32 %v806_v3, %v799_v45  ;;  %v1334_v3 = vmul.f32 %v1333_v36, %v2594_v52 }
 0x263   : > { %v946_v56 = vrot.slane %v945_v49, 1  ;;  %v1096_v58 = vrot.slane %v1095_v50, 1 }
 0x264   : > { %1037 = vrot.lane.b32.xlu1 %v1035_v51, %s2180_s13  ;;  %1600 = vrot.lane.b32.xlu0 %v1598_v53, %s2175_s26  ;;  %s2738_s26 = sld [smem:[#allocation8 + $0x5e]]  ;;  %v836_v51 = vstv %s2748_s14  ;;  %s2184_s14 = smov 47  }
 0x265   : > { %v947_v2 = vsel %vm636_vm3, %v945_v49, %v946_v56  ;;  %v1097_v5 = vsel %vm636_vm3, %v1095_v50, %v1096_v58  ;;  %v1615_v49 = vstv %s2740_s15  ;;  %s2183_s15 = smov 49  }
 0x266   : > { %v949_v12 = vadd.f32 %v947_v2, %v940_v44  ;;  %v2732_v13 = vadd.f32 %v1097_v5, %v1090_v35  ;;  %v813_v10 = vpop.permute.xlu1 %812  ;;  %v963_v11 = vpop.permute.xlu0 %962  ;;  %v1465_v35 = vstv %s2722_s19  ;;  %v1616_v58 = vmul.f32 %v1615_v49, %v2594_v52  ;;  %s1893_s19 = sld [smem:[#allocation8 + $0x37]] }
 0x267   : > { %v814_v9 = vrot.slane %v813_v10, 7  ;;  %v964_v16 = vrot.slane %v963_v11, 7  ;;  %v1466_v46 = vmul.f32 %v1465_v35, %v2594_v52 }
 0x268   : > { %v958_v18 = vadd.f32 %v956_v15, %v949_v12  ;;  %1459 = vrot.lane.b32.xlu1 %v1457_v8, %s2177_s30  ;;  %1327 = vrot.lane.b32.xlu0 %v1325_v14, %s2178_s8  ;;  %v1624_v12 = vstv %s2758_s27  ;;  %v1528_v14 = vstv %s2766_s24  ;;  %s2996_s27 = sld [smem:[#allocation3]]  ;;  %s1944_s24 = sshll.u32 %s2244_s4, 10 }
 0x269   : > { %v815_v19 = vsel %vm658_vm5, %v814_v9, %v813_v10  ;;  %v965_v20 = vsel %vm658_vm5, %v964_v16, %v963_v11  ;;  %v837_v11 = vmul.f32 %v836_v51, %v2572_v31 }
 0x26a   : > { %v817_v24 = vadd.f32 %v815_v19, %v808_v54  ;;  %v2750_v25 = vadd.f32 %v965_v20, %v958_v18  ;;  %v1235_v26 = vpop.permute.xlu1 %1234  ;;  %v1385_v28 = vpop.permute.xlu0 %1384  ;;  %v1186_v44 = vstv %s2738_s26  ;;  %v1625_v18 = vmul.f32 %v1624_v12, %v2594_v52  ;;  %s2182_s26 = smov 50  }
 0x26b   : > { %v1236_v32 = vrot.slane %v1235_v26, 1  ;;  %v1386_v34 = vrot.slane %v1385_v28, 1  ;;  %v1187_v56 = vmul.f32 %v1186_v44, %v2594_v52 }
 0x26c   : > { %1180 = vrot.lane.b32.xlu1 %v1178_v29, %s2178_s8  ;;  %1609 = vrot.lane.b32.xlu0 %v1607_v30, %s2177_s30  ;;  %s2774_s30 = sld [smem:[#allocation8 + $0x60]] }
 0x26d   : > { %v1237_v39 = vsel %vm626_vm2, %v1235_v26, %v1236_v32  ;;  %v1387_v40 = vsel %vm626_vm2, %v1385_v28, %v1386_v34  ;;  %v1529_v28 = vmul.f32 %v1528_v14, %v2491_v57 }
 0x26e   : > { %v1239_v41 = vadd.f32 %v1237_v39, %v1229_v37  ;;  %v2768_v42 = vadd.f32 %v1387_v40, %v1379_v38  ;;  %v822_v43 = vpop.permute.xlu1 %821  ;;  %v831_v45 = vpop.permute.xlu0 %830  ;;  %v1633_v40 = vstv %s2785_s9 }
 0x26f   : > { %v823_v47 = vrot.slane %v822_v43, 7  ;;  %v832_v48 = vrot.slane %v831_v45, 7 }
 0x270   : > { %1468 = vrot.lane.b32.xlu1 %v1466_v46, %s2179_s29  ;;  %1336 = vrot.lane.b32.xlu0 %v1334_v3, %s2180_s13  ;;  %v1634_v3 = vmul.f32 %v1633_v40, %v2594_v52 }
 0x271   : > { %v824_v50 = vsel %vm668_vm6, %v823_v47, %v822_v43  ;;  %v833_v2 = vsel %vm678_vm7, %v832_v48, %v831_v45 }
 0x272   : > { %v826_v53 = vadd.f32 %v824_v50, %v817_v24  ;;  %v1244_v54 = vpop.permute.xlu1 %1243  ;;  %v1253_v55 = vpop.permute.xlu0 %1252  ;;  %v1483_v24 = vstv %s2774_s30  ;;  %s3107_s30 = sshll.u32 %s2350_s11, 6 }
 0x273   : > { %v1245_v5 = vrot.slane %v1244_v54, 1  ;;  %v1254_v7 = vrot.slane %v1253_v55, 7  ;;  %v1484_v37 = vmul.f32 %v1483_v24, %v2594_v52  ;;  %s3009_s9 = scalar_lea.vmem [#allocation9], %s3107_s30 }
 0x274   : > { %v835_v10 = vadd.f32 %v833_v2, %v826_v53  ;;  %1189 = vrot.lane.b32.xlu1 %v1187_v56, %s2180_s13  ;;  %1618 = vrot.lane.b32.xlu0 %v1616_v58, %s2179_s29  ;;  %s1890_s29 = sld [smem:[#allocation8 + $0x34]] }
 0x275   : > { %v1246_v8 = vsel %vm636_vm3, %v1244_v54, %v1245_v5  ;;  %v1255_v20 = vsel %vm646_vm4, %v1254_v7, %v1253_v55 }
 0x276   : > { %v1248_v15 = vadd.f32 %v1246_v8, %v1239_v41  ;;  %v1105_v9 = vpop.permute.xlu1 %1104  ;;  %v1535_v16 = vpop.permute.xlu0 %1534  ;;  %v2796_v19 = vadd.f32 %v837_v11, %v835_v10  ;;  %v986_v41 = vstv %s2792_s17  ;;  %s1739_s17 = sshll.u32 %s3009_s9, 4  ;;  %s3029_s17 = int_to_ptr.vmem [resolvable:$true] %s1739_s17 }
 0x277   : > { %v1106_v21 = vrot.slane %v1105_v9, 7  ;;  %v1536_v22 = vrot.slane %v1535_v16, 1  ;;  %v987_v49 = vmul.f32 %v986_v41, %v2572_v31 }
 0x278   : > { %v1257_v26 = vadd.f32 %v1255_v20, %v1248_v15  ;;  %1477 = vrot.lane.b32.xlu1 %v1475_v17, %s2178_s8  ;;  %1627 = vrot.lane.b32.xlu0 %v1625_v18, %s2178_s8 }
 0x279   : > { %v1107_v29 = vsel %vm646_vm4, %v1106_v21, %v1105_v9  ;;  %v1537_v30 = vsel %vm626_vm2, %v1535_v16, %v1536_v22 }
 0x27a   : > { %v1109_v32 = vadd.f32 %v1107_v29, %v2732_v13  ;;  %v1539_v34 = vadd.f32 %v1537_v30, %v1529_v28  ;;  %v972_v35 = vpop.permute.xlu1 %971  ;;  %v981_v36 = vpop.permute.xlu0 %980 }
 0x27b   : > { %v973_v38 = vrot.slane %v972_v35, 7  ;;  %v982_v39 = vrot.slane %v981_v36, 7 }
 0x27c   : > { %1486 = vrot.lane.b32.xlu1 %v1484_v37, %s2180_s13 }
 0x27d   : > { %v974_v57 = vsel %vm668_vm6, %v973_v38, %v972_v35  ;;  %v983_v13 = vsel %vm678_vm7, %v982_v39, %v981_v36 }
 0x27e   : > { %v976_v43 = vadd.f32 %v974_v57, %v2750_v25  ;;  %v1394_v45 = vpop.permute.xlu1 %1393  ;;  %v1403_v46 = vpop.permute.xlu0 %1402  ;;  %v1137_v57 = vstv %s1890_s29 }
 0x27f   : > { %v1395_v47 = vrot.slane %v1394_v45, 1  ;;  %v1404_v48 = vrot.slane %v1403_v46, 7 }
 0x280   : > { %v985_v44 = vadd.f32 %v983_v13, %v976_v43  ;;  %1636 = vrot.lane.b32.xlu1 %v1634_v3, %s2180_s13  ;;  %s1891_s13 = sld [smem:[#allocation8 + $0x35]]  ;;  %v1138_v3 = vmul.f32 %v1137_v57, %v2572_v31 }
 0x281   : > { %v1396_v50 = vsel %vm636_vm3, %v1394_v45, %v1395_v47  ;;  %v1405_v55 = vsel %vm646_vm4, %v1404_v48, %v1403_v46 }
 0x282   : > { %v1398_v51 = vadd.f32 %v1396_v50, %v2768_v42  ;;  %v1114_v53 = vpop.permute.xlu1 %1113  ;;  %v1123_v54 = vpop.permute.xlu0 %1122  ;;  %v2818_v25 = vadd.f32 %v987_v49, %v985_v44 }
 0x283   : > { %v1115_v52 = vrot.slane %v1114_v53, 7  ;;  %v1124_v56 = vrot.slane %v1123_v54, 7 }
 0x284   : > { %v1407_v58 = vadd.f32 %v1405_v55, %v1398_v51 }
 0x285   : > { %v1116_v63 = vsel %vm658_vm5, %v1115_v52, %v1114_v53  ;;  %v1125_v12 = vsel %vm668_vm6, %v1124_v56, %v1123_v54 }
 0x286   : > { %v1118_v2 = vadd.f32 %v1116_v63, %v1109_v32  ;;  %v1262_v5 = vpop.permute.xlu1 %1261  ;;  %v1271_v7 = vpop.permute.xlu0 %1270  ;;  %v1285_v47 = vstv %s1891_s13  ;;  %s3027_s13 = scalar_lea.hbm %s3090_s5, %s1944_s24 }
 0x287   : > { %v1263_v10 = vrot.slane %v1262_v5, 7  ;;  %v1272_v11 = vrot.slane %v1271_v7, 7  ;;  %v1286_v53 = vmul.f32 %v1285_v47, %v2572_v31 }
 0x288   : > { %v1127_v8 = vadd.f32 %v1125_v12, %v1118_v2 }
 0x289   : > { %v1264_v42 = vsel %vm658_vm5, %v1263_v10, %v1262_v5  ;;  %v1273_v16 = vsel %vm668_vm6, %v1272_v11, %v1271_v7  ;;  %v1435_v10 = vstv %s1892_s18  ;;  %v1585_v11 = vstv %s1893_s19  ;;  %s1726_s18 = scalar_lea.sflag [#allocation6], %s2350_s11  ;;  %s2097_s19 = scalar_lea.vmem %s3029_s17, 1024 }
 0x28a   : > { %v1266_v14 = vadd.f32 %v1264_v42, %v1257_v26  ;;  %v1544_v15 = vpop.permute.xlu1 %1543  ;;  %v1553_v9 = vpop.permute.xlu0 %1552  ;;  %p2098_p5 = scmp.ne.s32.totalorder %s3029_s17, %s2097_s19 }
 0x28b   : > { %v1545_v17 = vrot.slane %v1544_v15, 1  ;;  %v1554_v18 = vrot.slane %v1553_v9, 7 }
 0x28c   : > { %v1275_v20 = vadd.f32 %v1273_v16, %v1266_v14  ;;  %p2099_p8 = pnand %p2098_p5, %p3108_p12 }
 0x28d   : > { %v1546_v21 = vsel %vm636_vm3, %v1544_v15, %v1545_v17  ;;  %v1555_v29 = vsel %vm646_vm4, %v1554_v18, %v1553_v9  ;;  %v1436_v17 = vmul.f32 %v1435_v10, %v2572_v31  ;;  %v1586_v18 = vmul.f32 %v1585_v11, %v2572_v31 }
 0x28e   : > { %v1548_v22 = vadd.f32 %v1546_v21, %v1539_v34  ;;  %v1412_v24 = vpop.permute.xlu1 %1411  ;;  %v1421_v28 = vpop.permute.xlu0 %1420  ;;  %p2100_p9 = pneg %p2099_p8 }
 0x28f   : > { %v1413_v30 = vrot.slane %v1412_v24, 7  ;;  %v1422_v32 = vrot.slane %v1421_v28, 7 }
 0x290   : > { %v1557_v35 = vadd.f32 %v1555_v29, %v1548_v22 }
 0x291   : > { %v1414_v26 = vsel %vm658_vm5, %v1413_v30, %v1412_v24  ;;  %v1423_v39 = vsel %vm668_vm6, %v1422_v32, %v1421_v28 }
 0x292   : > { %v1416_v36 = vadd.f32 %v1414_v26, %v1407_v58  ;;  %v1132_v37 = vpop.permute.xlu1 %1131  ;;  %v1571_v38 = vpop.permute.xlu0 %1570 }
 0x293   : > { %v1133_v40 = vrot.slane %v1132_v37, 7  ;;  %v1572_v54 = vrot.slane %v1571_v38, 7 }
 0x294   : > { %v1425_v41 = vadd.f32 %v1423_v39, %v1416_v36 }
 0x295   : > { %v1134_v34 = vsel %vm678_vm7, %v1133_v40, %v1132_v37  ;;  %v1573_v7 = vsel %vm668_vm6, %v1572_v54, %v1571_v38 }
 0x296   : > { %v1136_v43 = vadd.f32 %v1134_v34, %v1127_v8  ;;  %v1280_v45 = vpop.permute.xlu1 %1279  ;;  %v1580_v46 = vpop.permute.xlu0 %1579 }
 0x297   : > { %v1281_v13 = vrot.slane %v1280_v45, 7  ;;  %v1581_v56 = vrot.slane %v1580_v46, 7 }
 0x298   : > { %v2831_v48 = vadd.f32 %v1138_v3, %v1136_v43 }
 0x299   : > { %v1282_v44 = vsel %vm678_vm7, %v1281_v13, %v1280_v45  ;;  %v1582_v42 = vsel %vm678_vm7, %v1581_v56, %v1580_v46 }
 0x29a   : > { %v1284_v49 = vadd.f32 %v1282_v44, %v1275_v20  ;;  %v1562_v50 = vpop.permute.xlu1 %1561  ;;  %v691_v51 = vpop.permute.xlu0 %690 }
 0x29b   : > { %v1563_v55 = vrot.slane %v1562_v50, 7  ;;  %v692_v37 = vrot.slane %v691_v51, 1 }
 0x29c   : > { %v2835_v52 = vadd.f32 %v1286_v53, %v1284_v49 }
 0x29d   : > { %v1564_v58 = vsel %vm658_vm5, %v1563_v55, %v1562_v50  ;;  %v693_v40 = vsel %vm626_vm2, %v691_v51, %v692_v37 }
 0x29e   : > { %v1566_v63 = vadd.f32 %v1564_v58, %v1557_v35  ;;  %v1430_v2 = vpop.permute.xlu1 %1429  ;;  %v700_v5 = vpop.permute.xlu0 %699  ;;  %v695_v46 = vadd.f32 %v693_v40, %v2695_v27 }
 0x29f   : > { %v1431_v12 = vrot.slane %v1430_v2, 7  ;;  %v701_v39 = vrot.slane %v700_v5, 1 }
 0x2a0   : > { %v1575_v8 = vadd.f32 %v1573_v7, %v1566_v63 }
 0x2a1   : > { %v1432_v14 = vsel %vm678_vm7, %v1431_v12, %v1430_v2  ;;  %v702_v43 = vsel %vm636_vm3, %v700_v5, %v701_v39 }
 0x2a2   : > { %v1434_v15 = vadd.f32 %v1432_v14, %v1425_v41  ;;  %v843_v9 = vpop.permute.xlu1 %842  ;;  %v2841_v16 = vpop.permute.xlu0 %992  ;;  %v1584_v20 = vadd.f32 %v1582_v42, %v1575_v8  ;;  %v704_v44 = vadd.f32 %v702_v43, %v695_v46  ;;  %v2875_v8 = vsub.s32 0, %v2487_v33 }
 0x2a3   : > { %v844_v3 = vrot.slane %v843_v9, 1  ;;  %v2878_v42 = vsub.s32 1, %v2487_v33 }
 0x2a4   : > { %v2845_v21 = vadd.f32 %v1436_v17, %v1434_v15  ;;  %v2847_v22 = vadd.f32 %v1586_v18, %v1584_v20 }
 0x2a5   : > { %v845_v55 = vsel %vm626_vm2, %v843_v9, %v844_v3 }
 0x2a6   : > { %v852_v24 = vpop.permute.xlu1 %851  ;;  %v709_v28 = vpop.permute.xlu0 %708  ;;  %v847_v10 = vadd.f32 %v845_v55, %v2796_v19 }
 0x2a7   : > { %v710_v57 = vrot.slane %v709_v28, 1  ;;  %v853_v53 = vrot.slane %v852_v24, 1 }
 0x2a9   : > { %v711_v13 = vsel %vm646_vm4, %v709_v28, %v710_v57  ;;  %v854_v5 = vsel %vm636_vm3, %v852_v24, %v853_v53 }
 0x2aa   : > { %v861_v29 = vpop.permute.xlu1 %860  ;;  %v2849_v30 = vpop.permute.xlu0 %1001  ;;  %v713_v54 = vadd.f32 %v711_v13, %v704_v44  ;;  %v856_v17 = vadd.f32 %v854_v5, %v847_v10 }
 0x2ab   : > { %v862_v56 = vrot.slane %v861_v29, 1 }
 0x2ad   : > { %v863_v14 = vsel %vm646_vm4, %v861_v29, %v862_v56  ;;  %v994_v29 = vrot.slane %v2841_v16, 1 }
 0x2ae   : > { %v2851_v32 = vpop.permute.xlu1 %1143  ;;  %v720_v35 = vpop.permute.xlu0 %719  ;;  %v865_v19 = vadd.f32 %v863_v14, %v856_v17 }
 0x2af   : > { %v721_v45 = vrot.slane %v720_v35, 7  ;;  %v995_v3 = vsel %vm626_vm2, %v2841_v16, %v994_v29  ;;  %v1145_v17 = vrot.slane %v2851_v32, 1 }
 0x2b0   : > { %v997_v55 = vadd.f32 %v995_v3, %v2818_v25 }
 0x2b1   : > { %v722_v51 = vsel %vm658_vm5, %v721_v45, %v720_v35  ;;  %v2886_v35 = vsub.s32 2, %v2487_v33 }
 0x2b2   : > { %v870_v26 = vpop.permute.xlu1 %869  ;;  %v2853_v36 = vpop.permute.xlu0 %1010  ;;  %v724_v63 = vadd.f32 %v722_v51, %v713_v54 }
 0x2b3   : > { %v871_v7 = vrot.slane %v870_v26, 7  ;;  %v1012_v13 = vrot.slane %v2853_v36, 1 }
 0x2b5   : > { %v872_v28 = vsel %vm658_vm5, %v871_v7, %v870_v26  ;;  %v1003_v26 = vrot.slane %v2849_v30, 1  ;;  %v1013_v16 = vsel %vm646_vm4, %v2853_v36, %v1012_v13 }
 0x2b6   : > { %v2855_v38 = vpop.permute.xlu1 %1291  ;;  %v729_v31 = vpop.permute.xlu0 %728  ;;  %v874_v40 = vadd.f32 %v872_v28, %v865_v19 }
 0x2b7   : > { %v730_v47 = vrot.slane %v729_v31, 7  ;;  %v1004_v51 = vsel %vm636_vm3, %v2849_v30, %v1003_v26 }
 0x2b9   : > { %v731_v58 = vsel %vm668_vm6, %v730_v47, %v729_v31 }
 0x2ba   : > { %v2858_v41 = vpop.permute.xlu1 %1152  ;;  %v2860_v34 = vpop.permute.xlu0 %1019  ;;  %v733_v11 = vadd.f32 %v731_v58, %v724_v63 }
 0x2bb   : > { %v1021_v54 = vrot.slane %v2860_v34, 7 }
 0x2bd   : > { %v1022_v30 = vsel %vm658_vm5, %v1021_v54, %v2860_v34  ;;  %v1293_v34 = vrot.slane %v2855_v38, 1 }
 0x2be   : > { %v879_v49 = vpop.permute.xlu1 %878  ;;  %v2865_v50 = vpop.permute.xlu0 %1441 }
 0x2bf   : > { %v880_v15 = vrot.slane %v879_v49, 7 }
 0x2c1   : > { %v881_v39 = vsel %vm668_vm6, %v880_v15, %v879_v49 }
 0x2c2   : > { %v2870_v2 = vpop.permute.xlu1 %1300  ;;  %v738_v27 = vpop.permute.xlu0 %737  ;;  %v883_v33 = vadd.f32 %v881_v39, %v874_v40  ;;  %v1146_v39 = vsel %vm626_vm2, %v2851_v32, %v1145_v17 }
 0x2c3   : > { %v739_v12 = vrot.slane %v738_v27, 7  ;;  %v1302_v40 = vrot.slane %v2870_v2, 1  ;;  %v1148_v32 = vadd.f32 %v1146_v39, %v2831_v48 }
 0x2c5   : > { %v740_v9 = vsel %vm678_vm7, %v739_v12, %v738_v27  ;;  %v1006_v27 = vadd.f32 %v1004_v51, %v997_v55 }
 0x2c6   : > { %v742_v18 = vadd.f32 %v740_v9, %v733_v11  ;;  %v2882_v20 = vpop.permute.xlu1 %1162  ;;  %v1029_v24 = vpop.permute.xlu0 %1028 }
 0x2c7   : > { %v1030_v63 = vrot.slane %v1029_v24, 7  ;;  %v1015_v12 = vadd.f32 %v1013_v16, %v1006_v27 }
 0x2c8   : > { %v755_v37 = vrot.slane %v742_v18, %v2875_v8  ;;  %v759_v31 = vrot.slane %v742_v18, %v2878_v42  ;;  %v763_v46 = vrot.slane %v742_v18, %v2886_v35 }
 0x2c9   : > { %v1031_v10 = vsel %vm668_vm6, %v1030_v63, %v1029_v24  ;;  %v1024_v11 = vadd.f32 %v1022_v30, %v1015_v12 }
 0x2ca   : > { %v888_v57 = vpop.permute.xlu1 %887  ;;  %v2892_v43 = vpop.permute.xlu0 %1450  ;;  %766 = vrot.lane.b32.xlu1 %v759_v31, %s2181_s10  ;;  %764 = vrot.lane.b32.xlu0 %v755_v37, %s2181_s10  ;;  %v1154_v31 = vrot.slane %v2858_v41, 1 }
 0x2cb   : > { %v889_v45 = vrot.slane %v888_v57, 7  ;;  %v1033_v9 = vadd.f32 %v1031_v10, %v1024_v11  ;;  %v1452_v12 = vrot.slane %v2892_v43, 1 }
 0x2cd   : > { %v890_v47 = vsel %vm678_vm7, %v889_v45, %v888_v57  ;;  %v1164_v57 = vrot.slane %v2882_v20, 7 }
 0x2ce   : > { %v892_v44 = vadd.f32 %v890_v47, %v883_v33  ;;  %v1310_v49 = vpop.permute.xlu1 %1309  ;;  %v1172_v53 = vpop.permute.xlu0 %1171  ;;  %768 = vrot.lane.b32.xlu0 %v763_v46, %s2181_s10  ;;  %v1294_v33 = vsel %vm626_vm2, %v2855_v38, %v1293_v34  ;;  %v1155_v46 = vsel %vm636_vm3, %v2858_v41, %v1154_v31  ;;  %s2187_s10 = smov [#allocation9]  }
 0x2cf   : > { %v1311_v3 = vrot.slane %v1310_v49, 7  ;;  %v1173_v13 = vrot.slane %v1172_v53, 7  ;;  %v1165_v51 = vsel %vm646_vm4, %v1164_v57, %v2882_v20  ;;  %v1157_v38 = vadd.f32 %v1155_v46, %v1148_v32 }
 0x2d0   : > { %v905_v56 = vrot.slane %v892_v44, %v2875_v8  ;;  %v909_v58 = vrot.slane %v892_v44, %v2878_v42  ;;  %v913_v25 = vrot.slane %v892_v44, %v2886_v35  ;;  %v1303_v44 = vsel %vm636_vm3, %v2870_v2, %v1302_v40 }
 0x2d1   : > { %v1312_v48 = vsel %vm646_vm4, %v1311_v3, %v1310_v49  ;;  %v1174_v63 = vsel %vm658_vm5, %v1173_v13, %v1172_v53  ;;  %v1167_v2 = vadd.f32 %v1165_v51, %v1157_v38 }
 0x2d2   : > { %v2908_v5 = vpop.permute.xlu1 %1591  ;;  %v1319_v7 = vpop.permute.xlu0 %1318  ;;  %914 = vrot.lane.b32.xlu1 %v905_v56, %s2182_s26  ;;  %916 = vrot.lane.b32.xlu0 %v909_v58, %s2182_s26  ;;  %v1296_v56 = vadd.f32 %v1294_v33, %v2835_v52  ;;  %v1443_v58 = vrot.slane %v2865_v50, 1 }
 0x2d3   : > { %v1320_v54 = vrot.slane %v1319_v7, 7  ;;  %v1593_v49 = vrot.slane %v2908_v5, 1 }
 0x2d4   : > { %v1305_v30 = vadd.f32 %v1303_v44, %v1296_v56  ;;  %v1444_v10 = vsel %vm626_vm2, %v2865_v50, %v1443_v58 }
 0x2d5   : > { %v1321_v20 = vsel %vm658_vm5, %v1320_v54, %v1319_v7  ;;  %v1446_v39 = vadd.f32 %v1444_v10, %v2845_v21 }
 0x2d6   : > { %v1038_v14 = vpop.permute.xlu1 %1037  ;;  %v2914_v15 = vpop.permute.xlu0 %1600  ;;  %918 = vrot.lane.b32.xlu1 %v913_v25, %s2182_s26  ;;  %v1314_v11 = vadd.f32 %v1312_v48, %v1305_v30  ;;  %s2101_s26 = sshll.u32 %s2187_s10, 4  ;;  %s2102_s26 = int_to_ptr.vmem [resolvable:$false] %s2101_s26 }
 0x2d7   : > { %v1039_v36 = vrot.slane %v1038_v14, 7  ;;  %v1602_v31 = vrot.slane %v2914_v15, 1  ;;  %p2104_p10 = scmp.lt.s32.totalorder %s3029_s17, %s2102_s26 }
 0x2d8   : > { %v1323_v7 = vadd.f32 %v1321_v20, %v1314_v11 }
 0x2d9   : > { %v1040_v18 = vsel %vm678_vm7, %v1039_v36, %v1038_v14  ;;  %v1176_v14 = vadd.f32 %v1174_v63, %v1167_v2  ;;  %v1603_v21 = vsel %vm636_vm3, %v2914_v15, %v1602_v31 }
 0x2da   : > { %v1042_v28 = vadd.f32 %v1040_v18, %v1033_v9  ;;  %v1460_v19 = vpop.permute.xlu1 %1459  ;;  %v1328_v37 = vpop.permute.xlu0 %1327 }
 0x2db   : > { %v1329_v27 = vrot.slane %v1328_v37, 7  ;;  %v1461_v53 = vrot.slane %v1460_v19, 7 }
 0x2dc   : > { %v1055_v24 = vrot.slane %v1042_v28, %v2875_v8  ;;  %v1059_v29 = vrot.slane %v1042_v28, %v2878_v42  ;;  %v1063_v47 = vrot.slane %v1042_v28, %v2886_v35  ;;  %v1453_v28 = vsel %vm636_vm3, %v2892_v43, %v1452_v12 }
 0x2dd   : > { %v1330_v17 = vsel %vm668_vm6, %v1329_v27, %v1328_v37  ;;  %v1594_v37 = vsel %vm626_vm2, %v2908_v5, %v1593_v49  ;;  %v1462_v33 = vsel %vm646_vm4, %v1461_v53, %v1460_v19  ;;  %v1455_v3 = vadd.f32 %v1453_v28, %v1446_v39 }
 0x2de   : > { %v1181_v26 = vpop.permute.xlu1 %1180  ;;  %v2926_v45 = vpop.permute.xlu0 %1609  ;;  %1066 = vrot.lane.b32.xlu1 %v1059_v29, %s2183_s15  ;;  %1064 = vrot.lane.b32.xlu0 %v1055_v24, %s2183_s15  ;;  %v1332_v40 = vadd.f32 %v1330_v17, %v1323_v7  ;;  %v1596_v5 = vadd.f32 %v1594_v37, %v2847_v22 }
 0x2df   : > { %v1182_v55 = vrot.slane %v1181_v26, 7  ;;  %v1611_v43 = vrot.slane %v2926_v45, 7 }
 0x2e0   : > { %v1605_v48 = vadd.f32 %v1603_v21, %v1596_v5 }
 0x2e1   : > { %v1183_v25 = vsel %vm668_vm6, %v1182_v55, %v1181_v26  ;;  %v1464_v55 = vadd.f32 %v1462_v33, %v1455_v3  ;;  %v1612_v56 = vsel %vm646_vm4, %v1611_v43, %v2926_v45 }
 0x2e2   : > { %v1469_v41 = vpop.permute.xlu1 %1468  ;;  %v1337_v16 = vpop.permute.xlu0 %1336  ;;  %1068 = vrot.lane.b32.xlu0 %v1063_v47, %s2183_s15  ;;  %v1185_v34 = vadd.f32 %v1183_v25, %v1176_v14  ;;  %v1614_v30 = vadd.f32 %v1612_v56, %v1605_v48 }
 0x2e3   : > { %v1338_v52 = vrot.slane %v1337_v16, 7  ;;  %v1470_v24 = vrot.slane %v1469_v41, 7 }
 0x2e5   : > { %v1339_v50 = vsel %vm678_vm7, %v1338_v52, %v1337_v16  ;;  %v1471_v51 = vsel %vm658_vm5, %v1470_v24, %v1469_v41 }
 0x2e6   : > { %v1190_v36 = vpop.permute.xlu1 %1189  ;;  %v1619_v9 = vpop.permute.xlu0 %1618  ;;  %v1341_v13 = vadd.f32 %v1339_v50, %v1332_v40  ;;  %v1473_v15 = vadd.f32 %v1471_v51, %v1464_v55 }
 0x2e7   : > { %v1191_v18 = vrot.slane %v1190_v36, 7  ;;  %v1620_v54 = vrot.slane %v1619_v9, 7 }
 0x2e8   : > { %v1354_v41 = vrot.slane %v1341_v13, %v2875_v8  ;;  %v1358_v25 = vrot.slane %v1341_v13, %v2878_v42  ;;  %v1362_v52 = vrot.slane %v1341_v13, %v2886_v35 }
 0x2e9   : > { %v1192_v29 = vsel %vm678_vm7, %v1191_v18, %v1190_v36  ;;  %v1621_v22 = vsel %vm658_vm5, %v1620_v54, %v1619_v9  ;;  %vm1519_vm5 = vcmask 375808  }
 0x2ea   : > { %v1194_v57 = vadd.f32 %v1192_v29, %v1185_v34  ;;  %v1478_v26 = vpop.permute.xlu1 %1477  ;;  %v1628_v44 = vpop.permute.xlu0 %1627  ;;  %v1623_v10 = vadd.f32 %v1621_v22, %v1614_v30 }
 0x2eb   : > { %v1479_v46 = vrot.slane %v1478_v26, 7  ;;  %v1629_v58 = vrot.slane %v1628_v44, 7 }
 0x2ec   : > { %v1205_v32 = vrot.slane %v1194_v57, %v2875_v8  ;;  %v1209_v47 = vrot.slane %v1194_v57, %v2878_v42  ;;  %v1213_v63 = vrot.slane %v1194_v57, %v2886_v35  ;;  %v590_v57 = vand.u32 127, %v452_v23 }
 0x2ed   : > { %v1480_v38 = vsel %vm668_vm6, %v1479_v46, %v1478_v26  ;;  %v1630_v45 = vsel %vm668_vm6, %v1629_v58, %v1628_v44 }
 0x2ee   : > { %v1487_v19 = vpop.permute.xlu1 %1486  ;;  %1214 = vrot.lane.b32.xlu1 %v1205_v32, %s2178_s8  ;;  %1216 = vrot.lane.b32.xlu0 %v1209_v47, %s2178_s8  ;;  %v1482_v2 = vadd.f32 %v1480_v38, %v1473_v15  ;;  %v1632_v36 = vadd.f32 %v1630_v45, %v1623_v10  ;;  %v591_v26 = vadd.s32 128, %v590_v57  ;;  %v596_v43 = vand.u32 15, %v590_v57 }
 0x2ef   : > { %v1488_v16 = vrot.slane %v1487_v19, 7 }
 0x2f0   : > { %v603_v46 = vand.u32 15, %v591_v26  ;;  %v893_v13 = vadd.s32 4294967294, %v596_v43  ;;  %v743_v32 = vadd.s32 4294967293, %v596_v43  ;;  %v1043_v44 = vadd.s32 4294967295, %v596_v43 }
 0x2f1   : > { %v1489_v27 = vsel %vm678_vm7, %v1488_v16, %v1487_v19  ;;  %v1342_v23 = vadd.s32 1, %v596_v43  ;;  %v1492_v56 = vadd.s32 2, %v596_v43 }
 0x2f2   : > { %v1637_v12 = vpop.permute.xlu1 %1636  ;;  %1218 = vrot.lane.b32.xlu1 %v1213_v63, %s2178_s8  ;;  %1363 = vrot.lane.b32.xlu0 %v1354_v41, %s2184_s14  ;;  %v1491_v11 = vadd.f32 %v1489_v27, %v1482_v2  ;;  %s2185_s8 = smov 46   ;;  %v744_v47 = vadd.s32 4294967293, %v603_v46  ;;  %v1044_v21 = vadd.s32 4294967295, %v603_v46  ;;  %vm895_vm10 = vcmp.ge.s32.totalorder %v893_v13, 0 }
 0x2f3   : > { %v1638_v20 = vrot.slane %v1637_v12, 7  ;;  %v1343_v19 = vadd.s32 1, %v603_v46  ;;  %vm745_vm13 = vcmp.ge.s32.totalorder %v743_v32, 0  ;;  %vm1045_vm15 = vcmp.ge.s32.totalorder %v1043_v44, 0 }
 0x2f4   : > { %v1504_v9 = vrot.slane %v1491_v11, %v2875_v8  ;;  %v1508_v49 = vrot.slane %v1491_v11, %v2878_v42  ;;  %v1512_v17 = vrot.slane %v1491_v11, %v2886_v35  ;;  %vm746_vm14 = vcmp.ge.s32.totalorder %v744_v47, 0 }
 0x2f5   : > { %v1639_v14 = vsel %vm678_vm7, %v1638_v20, %v1637_v12  ;;  %vm1046_vm0 = vcmp.ge.s32.totalorder %v1044_v21, 0  ;;  %v1493_v27 = vadd.s32 2, %v603_v46  ;;  %vm1346_vm2 = vcmp.lt.s32.totalorder %v1342_v23, 16 }
 0x2f6   : > { %1365 = vrot.lane.b32.xlu1 %v1358_v25, %s2184_s14  ;;  %1367 = vrot.lane.b32.xlu0 %v1362_v52, %s2184_s14  ;;  %v1641_v53 = vadd.f32 %v1639_v14, %v1632_v36  ;;  %vm1347_vm3 = vcmp.lt.s32.totalorder %v1343_v19, 16  ;;  %vm1496_vm4 = vcmp.lt.s32.totalorder %v1492_v56, 16 }
 0x2f7   : > { %vm1497_vm7 = vcmp.lt.s32.totalorder %v1493_v27, 16 }
 0x2f8   : > { %v1654_v18 = vrot.slane %v1641_v53, %v2875_v8  ;;  %v1658_v28 = vrot.slane %v1641_v53, %v2878_v42  ;;  %v1662_v7 = vrot.slane %v1641_v53, %v2886_v35  ;;  %v894_v35 = vadd.s32 4294967294, %v603_v46 }
 0x2fa   : > { %1513 = vrot.lane.b32.xlu1 %v1504_v9, %s2185_s8  ;;  %1515 = vrot.lane.b32.xlu0 %v1508_v49, %s2185_s8  ;;  %vm896_vm11 = vcmp.ge.s32.totalorder %v894_v35, 0  ;;  %v1642_v49 = vadd.s32 3, %v596_v43  ;;  %v1678_v35 = vstv %s2996_s27 }
 0x2fe   : > { %1517 = vrot.lane.b32.xlu1 %v1512_v17, %s2185_s8  ;;  %1663 = vrot.lane.b32.xlu0 %v1654_v18, %s2186_s12 }
 0x302   : > { %1665 = vrot.lane.b32.xlu1 %v1658_v28, %s2186_s12  ;;  %1667 = vrot.lane.b32.xlu0 %v1662_v7, %s2186_s12  ;;  %v1643_v28 = vadd.s32 3, %v603_v46 }
 0x33c   : > { %v765_v34 = vpop.permute.xlu0 %764  ;;  %v767_v24 = vpop.permute.xlu1 %766 }
 0x33d   : > { %v771_v16 = vsel %vm770_vm9, %v765_v34, %v767_v24 }
 0x33e   : > { %v775_v30 = vsel %vm745_vm13, %v771_v16, 0.0 }
 0x340   : > { %v769_v31 = vpop.permute.xlu0 %768 }
 0x341   : > { %v772_v48 = vsel %vm770_vm9, %v767_v24, %v769_v31  ;;  %vm1647_vm9 = vcmp.lt.s32.totalorder %v1643_v28, 16 }
 0x342   : > { %v776_v2 = vsel %vm746_vm14, %v772_v48, 0.0 }
 0x344   : > { %v915_v50 = vpop.permute.xlu1 %914  ;;  %v917_v29 = vpop.permute.xlu0 %916 }
 0x345   : > { %v921_v5 = vsel %vm920_vm8, %v915_v50, %v917_v29 }
 0x346   : > { %v925_v63 = vsel %vm895_vm10, %v921_v5, 0.0 }
 0x347   : > { %v927_v52 = vadd.f32 %v925_v63, %v775_v30 }
 0x348   : > { %v919_v40 = vpop.permute.xlu1 %918 }
 0x349   : > { %v922_v55 = vsel %vm920_vm8, %v917_v29, %v919_v40  ;;  %vm1646_vm8 = vcmp.lt.s32.totalorder %v1642_v49, 16 }
 0x34a   : > { %v926_v22 = vsel %vm896_vm11, %v922_v55, 0.0 }
 0x34b   : > { %v928_v10 = vadd.f32 %v926_v22, %v776_v2 }
 0x350   : > { %v1065_v39 = vpop.permute.xlu0 %1064  ;;  %v1067_v37 = vpop.permute.xlu1 %1066 }
 0x351   : > { %v1071_v15 = vsel %vm1070_vm12, %v1065_v39, %v1067_v37 }
 0x352   : > { %v1075_v12 = vsel %vm1045_vm15, %v1071_v15, 0.0 }
 0x353   : > { %v1077_v53 = vadd.f32 %v1075_v12, %v927_v52 }
 0x354   : > { %v1069_v33 = vpop.permute.xlu0 %1068 }
 0x355   : > { %v1072_v41 = vsel %vm1070_vm12, %v1067_v37, %v1069_v33 }
 0x356   : > { %v1076_v45 = vsel %vm1046_vm0, %v1072_v41, 0.0 }
 0x357   : > { %v1078_v17 = vadd.f32 %v1076_v45, %v928_v10  ;;  %v2044_v45 = vld [vmem:[%s2356_s16] sm:$0xff]  ;;  %v2050_v10 = vld [vmem:[%s2356_s16 + $0x28] sm:$0xff] }
 0x360   : > { %v1215_v3 = vpop.permute.xlu1 %1214  ;;  %v1217_v42 = vpop.permute.xlu0 %1216 }
 0x361   : > { %v1220_v36 = vsel %vm668_vm6, %v1215_v3, %v1217_v42 }
 0x362   : > { %v1226_v50 = vadd.f32 %v1220_v36, %v1077_v53 }
 0x364   : > { %v1219_v51 = vpop.permute.xlu1 %1218  ;;  %v1364_v54 = vpop.permute.xlu0 %1363 }
 0x365   : > { %v1221_v9 = vsel %vm668_vm6, %v1217_v42, %v1219_v51  ;;  %vm1669_vm6 = vcmask 367616  }
 0x366   : > { %v1227_v29 = vadd.f32 %v1221_v9, %v1078_v17 }
 0x368   : > { %v1366_v38 = vpop.permute.xlu1 %1365  ;;  %v1368_v58 = vpop.permute.xlu0 %1367 }
 0x369   : > { %v1370_v11 = vsel %vm1369_vm1, %v1364_v54, %v1366_v38  ;;  %v1371_v14 = vsel %vm1369_vm1, %v1366_v38, %v1368_v58 }
 0x36a   : > { %v1374_v7 = vsel %vm1346_vm2, %v1370_v11, 0.0  ;;  %v1375_v34 = vsel %vm1347_vm3, %v1371_v14, 0.0  ;;  %v2051_v14 = vld [vmem:[%s2356_s16 + $0x38] sm:$0xff] }
 0x36b   : > { %v1376_v26 = vadd.f32 %v1374_v7, %v1226_v50  ;;  %v1377_v37 = vadd.f32 %v1375_v34, %v1227_v29 }
 0x36c   : > { %v1514_v20 = vpop.permute.xlu1 %1513  ;;  %v1516_v25 = vpop.permute.xlu0 %1515 }
 0x36d   : > { %v1520_v18 = vsel %vm1519_vm5, %v1514_v20, %v1516_v25  ;;  %v2045_v20 = vld [vmem:[%s2356_s16 + $0x10] sm:$0xff] }
 0x36e   : > { %v1524_v40 = vsel %vm1496_vm4, %v1520_v18, 0.0 }
 0x36f   : > { %v1526_v46 = vadd.f32 %v1524_v40, %v1376_v26 }
 0x370   : > { %v1518_v31 = vpop.permute.xlu1 %1517  ;;  %v1664_v24 = vpop.permute.xlu0 %1663 }
 0x371   : > { %v1521_v39 = vsel %vm1519_vm5, %v1516_v25, %v1518_v31 }
 0x372   : > { %v1525_v57 = vsel %vm1497_vm7, %v1521_v39, 0.0 }
 0x373   : > { %v1527_v3 = vadd.f32 %v1525_v57, %v1377_v37 }
 0x374   : > { %v1666_v33 = vpop.permute.xlu1 %1665  ;;  %v1668_v43 = vpop.permute.xlu0 %1667 }
 0x375   : > { %v1670_v42 = vsel %vm1669_vm6, %v1664_v24, %v1666_v33  ;;  %v1671_v13 = vsel %vm1669_vm6, %v1666_v33, %v1668_v43 }
 0x376   : > { %v1674_v32 = vsel %vm1646_vm8, %v1670_v42, 0.0  ;;  %v1675_v47 = vsel %vm1647_vm9, %v1671_v13, 0.0 }
 0x377   : > { %v1676_v44 = vadd.f32 %v1674_v32, %v1526_v46  ;;  %v1677_v21 = vadd.f32 %v1675_v47, %v1527_v3 }
 0x379   : > { %v1679_v51 = vadd.f32 %v1678_v35, %v1676_v44  ;;  %v1680_v54 = vadd.f32 %v1678_v35, %v1677_v21 }
 0x37b   : > { %v1936_v23 = vmul.f32 -1.442695, %v1679_v51  ;;  %v1937_v5 = vmul.f32 -1.442695, %v1680_v54 }
 0x37d   : > { %2036 = vpow2.f32 %v1936_v23 }
 0x37e   : > { %2038 = vpow2.f32 %v1937_v5 }
 0x387   : > { %v2037_v55 = vpop.eup %2036 }
 0x388   : > { %v2039_v19 = vpop.eup %2038  ;;  %v1687_v56 = vadd.f32 1.0, %v2037_v55 }
 0x389   : > { %v1688_v38 = vadd.f32 1.0, %v2039_v19 }
 0x38a   : > { %2040 = vrcp.f32 %v1687_v56 }
 0x38b   : > { %2042 = vrcp.f32 %v1688_v38 }
 0x394   : > { %v2041_v58 = vpop.eup %2040 }
 0x395   : > { %v2043_v16 = vpop.eup %2042  ;;  %v1696_v48 = vrot.slane %v2041_v58, %v2875_v8 }
 0x396   : > { %v1700_v15 = vrot.slane %v2043_v16, %v2875_v8 }
 0x397   : > { %v1701_v41 = vmul.f32 %v1696_v48, %v2453_v61  ;;  %v1703_v63 = vmul.f32 %v1696_v48, %v2447_v59  ;;  %v1705_v22 = vmul.f32 %v1696_v48, %v2469_v0  ;;  %v1707_v27 = vmul.f32 %v1696_v48, %v2459_v4  ;;  %v2046_v0 = vld [vmem:[%s2356_s16 + $0x20] sm:$0xff] }
 0x398   : > { %v1702_v30 = vmul.f32 %v1700_v15, %v2456_v62  ;;  %v1704_v8 = vmul.f32 %v1700_v15, %v2450_v60  ;;  %v1706_v2 = vmul.f32 %v1700_v15, %v2472_v1  ;;  %v1708_v12 = vmul.f32 %v1700_v15, %v2462_v6  ;;  %v2047_v62 = vld [vmem:[%s2356_s16 + $0x30] sm:$0xff]  ;;  %v2048_v60 = vld [vmem:[%s2356_s16 + $0x8] sm:$0xff]  ;;  %v2049_v1 = vld [vmem:[%s2356_s16 + $0x18] sm:$0xff]  ;;  %s2103_s16 = scalar_lea.vmem %s2102_s26, 2048 }
 0x399   : > { %v1709_v61 = vadd.f32 %v2044_v45, %v1701_v41  ;;  %v1711_v59 = vadd.f32 %v2045_v20, %v1703_v63  ;;  %v1713_v4 = vadd.f32 %v2046_v0, %v1705_v22  ;;  %v1715_v25 = vadd.f32 %v2047_v62, %v1707_v27  ;;  %p2105_p1 = scmp.lt.s32.totalorder %s2103_s16, %s2097_s19 }
 0x39a   : > { %v1710_v6 = vadd.f32 %v2048_v60, %v1702_v30  ;;  %v1712_v52 = vadd.f32 %v2049_v1, %v1704_v8  ;;  %v1714_v11 = vadd.f32 %v2050_v10, %v1706_v2  ;;  %v1716_v36 = vadd.f32 %v2051_v14, %v1708_v12 }
 0x39b   : > { %1717 = vst [vmem:[%s3009_s9] sm:$0xff] %v1709_v61  ;;  %1719 = vst [vmem:[%s3009_s9 + $0x10] sm:$0xff] %v1711_v59  ;;  %p2106_p4 = por %p2105_p1, %p2104_p10 }
 0x39c   : > { %1721 = vst [vmem:[%s3009_s9 + $0x20] sm:$0xff] %v1713_v4  ;;  %1723 = vst [vmem:[%s3009_s9 + $0x30] sm:$0xff] %v1715_v25 }
 0x39d   : > { %1718 = vst [vmem:[%s3009_s9 + $0x8] sm:$0xff] %v1710_v6  ;;  %1720 = vst [vmem:[%s3009_s9 + $0x18] sm:$0xff] %v1712_v52  ;;  %p2107_p11 = pnand %p2106_p4, %p2100_p9 }
 0x39e   : > { %1722 = vst [vmem:[%s3009_s9 + $0x28] sm:$0xff] %v1714_v11  ;;  %1724 = vst [vmem:[%s3009_s9 + $0x38] sm:$0xff] %v1716_v36 }
 0x39f   : > { %2110 = shalt.err (!%p2107_p11)
}
 0x3a0   : > { %s2111_s15 = scalar_lea.hbm %s3027_s13, 1024  ;;  %s2115_s12 = scalar_lea.hbm %s3090_s5, 2048 }
 0x3a1   : > { %p2112_p0 = scmp.ne.s32.totalorder %s3027_s13, %s2111_s15  ;;  %p2116_p6 = scmp.lt.u32.totalorder %s3027_s13, %s3090_s5 }
 0x3a2   : > { %p2117_p3 = scmp.lt.u32.totalorder %s2115_s12, %s2111_s15  ;;  %p2119_p5 = scmp.lt.u32.totalorder %s2111_s15, %s3027_s13 }
 0x3a3   : > { %p2113_p2 = pnand %p2112_p0, %p3108_p12 }
 0x3a4   : > { %p2118_p13 = por %p2117_p3, %p2116_p6 }
 0x3a5   : > { %p2114_p7 = pneg %p2113_p2 }
 0x3a6   : > { %p2120_p8 = por %p2119_p5, %p2118_p13 }
 0x3a8   : > { %p2121_p9 = pnand %p2120_p8, %p2114_p7 }
 0x3aa   : > { %2124 = shalt.err (!%p2121_p9)
}
 0x3ab   : > { %s2188_s30 = smov 256   ;;  %s2189_s9 = smov 16  }
 0x3ac   : > { %1951 = dma.vmem_to_hbm [thread:$0]  (%p3108_p12), %s3029_s17, 1024, %s3027_s13, %s1726_s18, %s2188_s30, %s2188_s30, %s2189_s9  }
 0x3ad PF: > { %s1754_s4 = sand.u32 1, %s2155_s20   ;;  %p3109_p10 = scmp.ne.s32.totalorder %s3099_s7, 0 }
 0x3ae   : > { %p3110_p1 = scmp.ge.s32.totalorder %s2167_s23, 2  ;;  %s1755_s29 = scalar_lea.sflag [#allocation6], %s1754_s4 }
 0x3b0   : > { %p1962_p4 = pnand %p3110_p1, %p3109_p10 }
 0x3b2   : > { %2150 = dma.done.wait (!%p1962_p4), %s1755_s29, 1024  }
 0x3b3   : > { %2152 = vsyncadd (!%p1962_p4), %s1755_s29, 4294966272  ;;  %p20_p11 = scmp.ge.s32.totalorder %s2248_s25, 4   ;;  %s3111_s20 = smov %s2159_s21 }
 0x3b4   : > { %s3112_s21 = smov %s2163_s22  ;;  %s3113_s22 = smov %s2260_s28 }
 0x3b5   : > { %s3114_s23 = smov %s2248_s25  ;;  %22 = sbr.rel (!%p20_p11) target bundleno = 8 (0x8), region = 95 }
 0x3bc   :  { %1760 = vsyncpa [#allocation5], 1 }
 0x3bd   :  { %1762 = vsyncpa [#allocation5 + $0x1], 1 }
 0x3be   :  { %1763 = vsyncpa [#allocation6], 1 }
 0x3bf   :  { %1765 = vsyncpa [#allocation6 + $0x1], 1 }
 0x3c0   :  { %1766 = vsyncpa [#allocation7], 1 }
 0x3c1   :  { %1768 = vsyncpa [#allocation7 + $0x1], 1 }

</bundles_post_ra>
